<compile_context>
chip_gen: v7x
topology: tpu7x:2x2x1
jax: 0.10.0
libtpu: 0.0.40
codegen_flags: <defaults>
</compile_context>

<pallas_src>
import math

import jax
import jax.numpy as jnp
from jax.experimental import pallas as pl
from jax.experimental.pallas import tpu as pltpu

# ---------------- model hyper-parameters (small, lane-dense synthetic sizes) --------
BATCH = 1            # EaModel.forward's argmax/concat semantics assume batch 1
SEQ = 8
HIDDEN = 128         # lane-dense (multiple of 128)
N_HEADS = 4
HEAD_DIM = HIDDEN // N_HEADS     # 32
INTER = 256
VOCAB = 1024
TOP_K = 10
RMS_EPS = 1e-6
LM_HEAD_TILE_N = 512             # vocab tile: lane-dense, multiple of 256 (v6e/v7x MXU)
VMEM_LIMIT_BYTES = 48 * 1024 * 1024  # safe on v7x (64 MiB physical), ample on v5e/v6e


# ------------------------- in-kernel helper math ------------------------------------

def _mm(a_bf16, w_bf16):
    """bf16 x bf16 matmul with f32 accumulation (native MXU rate)."""
    return jnp.dot(a_bf16, w_bf16, preferred_element_type=jnp.float32)


def _rms(x_f32, w_row):
    var = jnp.mean(x_f32 * x_f32, axis=-1, keepdims=True)
    return x_f32 * jax.lax.rsqrt(var + RMS_EPS) * w_row


def _decoder_body(x, in_norm, wqkv, wo, post_norm, wgu, wd,
                  head_buf, attn_buf, *, use_input_norm):
    """Fused LLaMA-style decoder layer on a VMEM-resident (M, H) f32 activation.

    head_buf: VMEM (3, N_HEADS, M, HEAD_DIM) bf16 scratch (head-major Q/K/V staging)
    attn_buf: VMEM (M, H) f32 scratch (per-head attention output slices)
    """
    # TODO(synk): rotary position embeddings omitted in this synthetic stand-in.
    M, H = x.shape

    h = _rms(x, in_norm) if use_input_norm else x

    # Stacked QKV projection: one lane-dense (M, 3H) matmul, bf16 operands.
    qkv = _mm(h.astype(jnp.bfloat16), wqkv)           # (M, 3H) f32 accumulate
    qkvb = qkv.astype(jnp.bfloat16)

    # Stage Q/K/V head-major into VMEM scratch: enables a single batched MXU einsum
    # per matmul (instead of per-head K=HEAD_DIM mini-matmuls + concatenate).
    for hd in range(N_HEADS):
        lo = hd * HEAD_DIM
        head_buf[0, hd] = qkvb[:, lo:lo + HEAD_DIM]
        head_buf[1, hd] = qkvb[:, H + lo:H + lo + HEAD_DIM]
        head_buf[2, hd] = qkvb[:, 2 * H + lo:2 * H + lo + HEAD_DIM]
    qh = head_buf[0]                                   # (NH, M, HD) bf16
    kh = head_buf[1]
    vh = head_buf[2]

    # Batched causal attention over all heads (bf16 operands, f32 accumulate/softmax).
    s = jnp.einsum('hqd,hkd->hqk', qh, kh, preferred_element_type=jnp.float32)
    s = s * jnp.float32(1.0 / math.sqrt(HEAD_DIM))
    row = jax.lax.broadcasted_iota(jnp.int32, (M, M), 0)
    col = jax.lax.broadcasted_iota(jnp.int32, (M, M), 1)
    s = jnp.where((col <= row)[None, :, :], s, jnp.float32(-1e30))
    s = s - jnp.max(s, axis=-1, keepdims=True)
    p = jnp.exp(s)
    p = p * pl.reciprocal(jnp.sum(p, axis=-1, keepdims=True), approx=True)
    a = jnp.einsum('hqk,hkd->hqd', p.astype(jnp.bfloat16), vh,
                   preferred_element_type=jnp.float32)  # (NH, M, HD) f32
    for hd in range(N_HEADS):
        attn_buf[:, hd * HEAD_DIM:(hd + 1) * HEAD_DIM] = a[hd]

    x = x + _mm(attn_buf[...].astype(jnp.bfloat16), wo)   # residual 1 (f32)

    h2 = _rms(x, post_norm)
    gu = _mm(h2.astype(jnp.bfloat16), wgu)                 # stacked gate+up (M, 2*INTER)
    g = gu[:, :INTER]
    u = gu[:, INTER:]
    act = (g * jax.nn.sigmoid(g)) * u                      # SiLU gate in f32
    x = x + _mm(act.astype(jnp.bfloat16), wd)              # residual 2 (f32)
    return x


# ---------------------------- Pallas kernels ----------------------------------------

def _base_layer_kernel(x_ref, in_norm_ref, wqkv_ref, wo_ref, post_norm_ref,
                       wgu_ref, wd_ref, fin_norm_ref, o_ref, head_buf, attn_buf):
    x = x_ref[...].astype(jnp.float32)
    out = _decoder_body(x, in_norm_ref[...], wqkv_ref[...], wo_ref[...],
                        post_norm_ref[...], wgu_ref[...], wd_ref[...],
                        head_buf, attn_buf, use_input_norm=True)
    # base_model.model applies the final RMSNorm before returning hidden states
    o_ref[...] = _rms(out, fin_norm_ref[...]).astype(o_ref.dtype)


def _ea_layer_kernel(emb_ref, hid_ref, fc_wl_ref, fc_wr_ref, fc_b_ref,
                     wqkv_ref, wo_ref, post_norm_ref, wgu_ref, wd_ref,
                     o_ref, head_buf, attn_buf):
    # fc(concat(emb, hidden)) == emb @ Wl + hidden @ Wr + b  (no concat)
    h = (_mm(emb_ref[...], fc_wl_ref[...])
         + _mm(hid_ref[...], fc_wr_ref[...])
         + fc_b_ref[...])
    out = _decoder_body(h, None, wqkv_ref[...], wo_ref[...],
                        post_norm_ref[...], wgu_ref[...], wd_ref[...],
                        head_buf, attn_buf, use_input_norm=False)
    o_ref[...] = out.astype(o_ref.dtype)


def _lm_head_kernel(x_ref, w_ref, o_ref):
    o_ref[...] = _mm(x_ref[...], w_ref[...]).astype(o_ref.dtype)


# ------------------------------ kernel wrappers --------------------------------------

def _layer_scratch(m):
    return [pltpu.VMEM((3, N_HEADS, m, HEAD_DIM), jnp.bfloat16),
            pltpu.VMEM((m, HIDDEN), jnp.float32)]


def fused_base_layer(x2d, layer_p, final_norm):
    # TODO(synk): at realistic H/INTER, add a K(H)-tiled grid axis (P1+P3 accumulator)
    #             to stream wqkv/wgu/wd instead of keeping whole weights VMEM-resident,
    #             and an M row-tile axis marked "parallel" for the v7x second TC.
    M, H = x2d.shape
    return pl.pallas_call(
        _base_layer_kernel,
        out_shape=jax.ShapeDtypeStruct((M, H), jnp.bfloat16),
        scratch_shapes=_layer_scratch(M),
        compiler_params=pltpu.CompilerParams(vmem_limit_bytes=VMEM_LIMIT_BYTES),
    )(x2d, layer_p['input_norm'], layer_p['wqkv'], layer_p['wo'],
      layer_p['post_norm'], layer_p['wgu'], layer_p['wd'], final_norm)


def fused_ea_layer(emb2d, hid2d, params):
    M, H = hid2d.shape
    p = params['ea_layer']
    return pl.pallas_call(
        _ea_layer_kernel,
        out_shape=jax.ShapeDtypeStruct((M, H), jnp.bfloat16),
        scratch_shapes=_layer_scratch(M),
        compiler_params=pltpu.CompilerParams(vmem_limit_bytes=VMEM_LIMIT_BYTES),
    )(emb2d, hid2d, params['ea_fc_wl'], params['ea_fc_wr'], params['ea_fc_b'],
      p['wqkv'], p['wo'], p['post_norm'], p['wgu'], p['wd'])


def lm_head(x2d, w):
    """Vocab-tiled lm_head: (H, V) weight streamed in lane-dense tiles; grid uses
    cdiv + zero-padded vocab tail (no silent truncation); axis marked "parallel"."""
    M, H = x2d.shape
    V = w.shape[1]
    tn = min(LM_HEAD_TILE_N, pl.cdiv(V, 128) * 128)
    v_pad = pl.cdiv(V, tn) * tn
    if v_pad != V:
        w = jnp.pad(w, ((0, 0), (0, v_pad - V)))
    out = pl.pallas_call(
        _lm_head_kernel,
        out_shape=jax.ShapeDtypeStruct((M, v_pad), jnp.bfloat16),
        grid=(v_pad // tn,),
        in_specs=[pl.BlockSpec((M, H), lambda j: (0, 0)),
                  pl.BlockSpec((H, tn), lambda j: (0, j))],
        out_specs=pl.BlockSpec((M, tn), lambda j: (0, j)),
        compiler_params=pltpu.CompilerParams(
            dimension_semantics=("parallel",),
            vmem_limit_bytes=VMEM_LIMIT_BYTES),
    )(x2d, w)
    return out[:, :V] if v_pad != V else out


# --------------------------- model composition ---------------------------------------

def base_model_forward(params, input_ids):
    """Stand-in for base_model.model(input_ids) -> last hidden states (bf16)."""
    x = jnp.take(params['embed'], input_ids, axis=0)            # (B, S, H) bf16
    B, S, H = x.shape
    h = fused_base_layer(x.reshape(B * S, H), params['base_layer'],
                         params['final_norm'])
    return h.reshape(B, S, H)


def ea_topk_generate(params, hidden_states, input_ids):
    """EAGLE ea_layer.topK_genrate: draft step on (shifted tokens, hidden)."""
    # TODO(synk): full multi-level tree drafting / KV cache of topK_genrate not
    #             reproduced; single fused draft step + top-k head logits only.
    # TODO(synk): fuse the draft lm_head with the top-k selection (running top-k
    #             scratch across vocab tiles) to avoid materializing (B, V) logits.
    B, S, H = hidden_states.shape
    tok = input_ids[:, 1:]                                       # (B, S) shifted
    emb = jnp.take(params['ea_embed'], tok, axis=0)              # (B, S, H) bf16
    h = fused_ea_layer(emb.reshape(B * S, H),
                       hidden_states.reshape(B * S, H), params)
    h = h.reshape(B, S, H)
    last = h[:, -1]                                              # (B, H)
    draft_logits = lm_head(last, params['lm_head'])              # shared head, bf16
    topk_vals, topk_idx = jax.lax.top_k(draft_logits.astype(jnp.float32), TOP_K)
    return topk_vals, topk_idx


def ea_model_forward(params, input_ids, output_orig=True, init=True):
    """EaModel.forward semantics (inference path, init=True, greedy)."""
    assert input_ids.shape[0] == 1, "EaModel.forward greedy path assumes batch 1"
    hidden_states = base_model_forward(params, input_ids)        # outputs[0]
    B, S, H = hidden_states.shape
    orig = lm_head(hidden_states.reshape(B * S, H),
                   params['lm_head']).reshape(B, S, VOCAB)       # lm_head(outputs[0])

    # token = torch.argmax(orig[:, -1]); token = token[None, None]
    flat = orig[:, -1].reshape(-1)
    token = jnp.argmax(flat).astype(input_ids.dtype)[None, None]
    input_ids_ext = jnp.concatenate([input_ids, token], axis=1)  # (B, S+1)

    ea_logits = ea_topk_generate(params, hidden_states, input_ids_ext)
    if output_orig:
        return ea_logits, orig, hidden_states, token
    return ea_logits, hidden_states, token


# ------------------------------ parameters -------------------------------------------

def init_params(key):
    keys = list(jax.random.split(key, 32))
    it = iter(keys)

    def w(shape, scale=0.05, dtype=jnp.bfloat16):
        return (scale * jax.random.normal(next(it), shape, jnp.float32)).astype(dtype)

    def layer_params(with_input_norm=True):
        # All projection weights pre-transposed to (in, out) layout for plain jnp.dot.
        p = dict(
            post_norm=jnp.ones((1, HIDDEN), jnp.float32),
            wqkv=w((HIDDEN, 3 * HIDDEN)),
            wo=w((HIDDEN, HIDDEN)),
            wgu=w((HIDDEN, 2 * INTER)),
            wd=w((INTER, HIDDEN)),
        )
        if with_input_norm:
            p['input_norm'] = jnp.ones((1, HIDDEN), jnp.float32)
        return p

    return dict(
        embed=w((VOCAB, HIDDEN), dtype=jnp.bfloat16),
        final_norm=jnp.ones((1, HIDDEN), jnp.float32),
        lm_head=w((HIDDEN, VOCAB)),                 # (in, out), bf16 MXU operand
        base_layer=layer_params(with_input_norm=True),
        ea_embed=w((VOCAB, HIDDEN), dtype=jnp.bfloat16),
        # ea_fc (out=H, in=2H) split into emb-half / hidden-half, each (in=H, out=H)
        ea_fc_wl=w((HIDDEN, HIDDEN)),
        ea_fc_wr=w((HIDDEN, HIDDEN)),
        ea_fc_b=jnp.zeros((1, HIDDEN), jnp.float32),
        ea_layer=layer_params(with_input_norm=False),
    )


# --------------------------------- main -----------------------------------------------

if __name__ == "__main__":
    key = jax.random.PRNGKey(0)
    pkey, dkey = jax.random.split(key)
    params = init_params(pkey)
    input_ids = jax.random.randint(dkey, (BATCH, SEQ), 0, VOCAB, dtype=jnp.int32)

    (ea_vals, ea_idx), orig, hidden_states, token = ea_model_forward(
        params, input_ids, output_orig=True, init=True)

    jax.block_until_ready((ea_vals, ea_idx, orig, hidden_states, token))
    assert ea_vals.shape == (BATCH, TOP_K)
    assert ea_idx.shape == (BATCH, TOP_K)
    assert orig.shape == (BATCH, SEQ, VOCAB)
    assert hidden_states.shape == (BATCH, SEQ, HIDDEN)
    assert token.shape == (1, 1)
    print("KERNEL_OK")
</pallas_src>

<mosaic_0001>
module attributes {stable_mosaic.version = 11 : i64} {
  func.func @_base_layer_kernel(%arg0: memref<8x128xbf16, #tpu.memory_space<vmem>>, %arg1: memref<1x128xf32, #tpu.memory_space<vmem>>, %arg2: memref<128x384xbf16, #tpu.memory_space<vmem>>, %arg3: memref<128x128xbf16, #tpu.memory_space<vmem>>, %arg4: memref<1x128xf32, #tpu.memory_space<vmem>>, %arg5: memref<128x512xbf16, #tpu.memory_space<vmem>>, %arg6: memref<256x128xbf16, #tpu.memory_space<vmem>>, %arg7: memref<1x128xf32, #tpu.memory_space<vmem>>, %arg8: memref<8x128xbf16, #tpu.memory_space<vmem>>, %arg9: memref<3x4x8x32xbf16, #tpu.memory_space<vmem>>, %arg10: memref<8x128xf32, #tpu.memory_space<vmem>>) attributes {dimension_semantics = [], scalar_prefetch = 0 : i64, scratch_operands = 2 : i64, tpu.core_type = #tpu.core_type<tc>} {
    %c0 = arith.constant 0 : index
    %c0_0 = arith.constant 0 : index
    %0 = vector.load %arg0[%c0, %c0_0] : memref<8x128xbf16, #tpu.memory_space<vmem>>, vector<8x128xbf16>
    %1 = arith.extf %0 : vector<8x128xbf16> to vector<8x128xf32>
    %c0_1 = arith.constant 0 : index
    %c0_2 = arith.constant 0 : index
    %2 = vector.load %arg1[%c0_1, %c0_2] : memref<1x128xf32, #tpu.memory_space<vmem>>, vector<1x128xf32>
    %c0_3 = arith.constant 0 : index
    %c0_4 = arith.constant 0 : index
    %3 = vector.load %arg2[%c0_3, %c0_4] : memref<128x384xbf16, #tpu.memory_space<vmem>>, vector<128x384xbf16>
    %c0_5 = arith.constant 0 : index
    %c0_6 = arith.constant 0 : index
    %4 = vector.load %arg3[%c0_5, %c0_6] : memref<128x128xbf16, #tpu.memory_space<vmem>>, vector<128x128xbf16>
    %c0_7 = arith.constant 0 : index
    %c0_8 = arith.constant 0 : index
    %5 = vector.load %arg4[%c0_7, %c0_8] : memref<1x128xf32, #tpu.memory_space<vmem>>, vector<1x128xf32>
    %c0_9 = arith.constant 0 : index
    %c0_10 = arith.constant 0 : index
    %6 = vector.load %arg5[%c0_9, %c0_10] : memref<128x512xbf16, #tpu.memory_space<vmem>>, vector<128x512xbf16>
    %c0_11 = arith.constant 0 : index
    %c0_12 = arith.constant 0 : index
    %7 = vector.load %arg6[%c0_11, %c0_12] : memref<256x128xbf16, #tpu.memory_space<vmem>>, vector<256x128xbf16>
    %8 = arith.mulf %1, %1 : vector<8x128xf32>
    %cst = arith.constant dense<0.000000e+00> : vector<8xf32>
    %9 = vector.multi_reduction <add>, %8, %cst [1] : vector<8x128xf32> to vector<8xf32>
    %10 = vector.shape_cast %9 : vector<8xf32> to vector<8x1xf32>
    %cst_13 = arith.constant 1.280000e+02 : f32
    %11 = vector.broadcast %cst_13 : f32 to vector<8x1xf32>
    %12 = arith.divf %10, %11 : vector<8x1xf32>
    %cst_14 = arith.constant 9.99999997E-7 : f32
    %13 = vector.broadcast %cst_14 : f32 to vector<8x1xf32>
    %14 = arith.addf %12, %13 : vector<8x1xf32>
    %15 = math.rsqrt %14 : vector<8x1xf32>
    %16 = vector.broadcast %15 : vector<8x1xf32> to vector<8x128xf32>
    %17 = arith.mulf %1, %16 : vector<8x128xf32>
    %18 = vector.broadcast %2 : vector<1x128xf32> to vector<8x128xf32>
    %19 = arith.mulf %17, %18 : vector<8x128xf32>
    %20 = arith.truncf %19 : vector<8x128xf32> to vector<8x128xbf16>
    %cst_15 = arith.constant dense<0.000000e+00> : vector<8x384xf32>
    %21 = tpu.matmul %20, %3, %cst_15 {dimension_numbers = #tpu.dot_dimension_numbers<[1], [0], [0], [1], [0, 0, 1, 1], [], []>} : vector<8x128xbf16>, vector<128x384xbf16>, vector<8x384xf32> -> vector<8x384xf32>
    %22 = arith.truncf %21 : vector<8x384xf32> to vector<8x384xbf16>
    %23 = vector.extract_strided_slice %22 {offsets = [0, 0], sizes = [8, 32], strides = [1, 1]} : vector<8x384xbf16> to vector<8x32xbf16>
    %c0_16 = arith.constant 0 : index
    %c0_17 = arith.constant 0 : index
    %c0_18 = arith.constant 0 : index
    %c0_19 = arith.constant 0 : index
    %24 = vector.load %arg9[%c0_16, %c0_17, %c0_18, %c0_19] : memref<3x4x8x32xbf16, #tpu.memory_space<vmem>>, vector<1x1x8x32xbf16>
    %25 = vector.shape_cast %24 : vector<1x1x8x32xbf16> to vector<8x32xbf16>
    %26 = vector.shape_cast %23 : vector<8x32xbf16> to vector<1x1x8x32xbf16>
    tpu.vector_store %arg9[%c0_16, %c0_17, %c0_18, %c0_19], %26 {strides = array<i32>} : memref<3x4x8x32xbf16, #tpu.memory_space<vmem>>, vector<1x1x8x32xbf16>,
    %27 = vector.extract_strided_slice %22 {offsets = [0, 128], sizes = [8, 32], strides = [1, 1]} : vector<8x384xbf16> to vector<8x32xbf16>
    %c1 = arith.constant 1 : index
    %c0_20 = arith.constant 0 : index
    %c0_21 = arith.constant 0 : index
    %c0_22 = arith.constant 0 : index
    %28 = vector.load %arg9[%c1, %c0_20, %c0_21, %c0_22] : memref<3x4x8x32xbf16, #tpu.memory_space<vmem>>, vector<1x1x8x32xbf16>
    %29 = vector.shape_cast %28 : vector<1x1x8x32xbf16> to vector<8x32xbf16>
    %30 = vector.shape_cast %27 : vector<8x32xbf16> to vector<1x1x8x32xbf16>
    tpu.vector_store %arg9[%c1, %c0_20, %c0_21, %c0_22], %30 {strides = array<i32>} : memref<3x4x8x32xbf16, #tpu.memory_space<vmem>>, vector<1x1x8x32xbf16>,
    %31 = vector.extract_strided_slice %22 {offsets = [0, 256], sizes = [8, 32], strides = [1, 1]} : vector<8x384xbf16> to vector<8x32xbf16>
    %c2 = arith.constant 2 : index
    %c0_23 = arith.constant 0 : index
    %c0_24 = arith.constant 0 : index
    %c0_25 = arith.constant 0 : index
    %32 = vector.load %arg9[%c2, %c0_23, %c0_24, %c0_25] : memref<3x4x8x32xbf16, #tpu.memory_space<vmem>>, vector<1x1x8x32xbf16>
    %33 = vector.shape_cast %32 : vector<1x1x8x32xbf16> to vector<8x32xbf16>
    %34 = vector.shape_cast %31 : vector<8x32xbf16> to vector<1x1x8x32xbf16>
    tpu.vector_store %arg9[%c2, %c0_23, %c0_24, %c0_25], %34 {strides = array<i32>} : memref<3x4x8x32xbf16, #tpu.memory_space<vmem>>, vector<1x1x8x32xbf16>,
    %35 = vector.extract_strided_slice %22 {offsets = [0, 32], sizes = [8, 32], strides = [1, 1]} : vector<8x384xbf16> to vector<8x32xbf16>
    %c0_26 = arith.constant 0 : index
    %c1_27 = arith.constant 1 : index
    %c0_28 = arith.constant 0 : index
    %c0_29 = arith.constant 0 : index
    %36 = vector.load %arg9[%c0_26, %c1_27, %c0_28, %c0_29] : memref<3x4x8x32xbf16, #tpu.memory_space<vmem>>, vector<1x1x8x32xbf16>
    %37 = vector.shape_cast %36 : vector<1x1x8x32xbf16> to vector<8x32xbf16>
    %38 = vector.shape_cast %35 : vector<8x32xbf16> to vector<1x1x8x32xbf16>
    tpu.vector_store %arg9[%c0_26, %c1_27, %c0_28, %c0_29], %38 {strides = array<i32>} : memref<3x4x8x32xbf16, #tpu.memory_space<vmem>>, vector<1x1x8x32xbf16>,
    %39 = vector.extract_strided_slice %22 {offsets = [0, 160], sizes = [8, 32], strides = [1, 1]} : vector<8x384xbf16> to vector<8x32xbf16>
    %c1_30 = arith.constant 1 : index
    %c1_31 = arith.constant 1 : index
    %c0_32 = arith.constant 0 : index
    %c0_33 = arith.constant 0 : index
    %40 = vector.load %arg9[%c1_30, %c1_31, %c0_32, %c0_33] : memref<3x4x8x32xbf16, #tpu.memory_space<vmem>>, vector<1x1x8x32xbf16>
    %41 = vector.shape_cast %40 : vector<1x1x8x32xbf16> to vector<8x32xbf16>
    %42 = vector.shape_cast %39 : vector<8x32xbf16> to vector<1x1x8x32xbf16>
    tpu.vector_store %arg9[%c1_30, %c1_31, %c0_32, %c0_33], %42 {strides = array<i32>} : memref<3x4x8x32xbf16, #tpu.memory_space<vmem>>, vector<1x1x8x32xbf16>,
    %43 = vector.extract_strided_slice %22 {offsets = [0, 288], sizes = [8, 32], strides = [1, 1]} : vector<8x384xbf16> to vector<8x32xbf16>
    %c2_34 = arith.constant 2 : index
    %c1_35 = arith.constant 1 : index
    %c0_36 = arith.constant 0 : index
    %c0_37 = arith.constant 0 : index
    %44 = vector.load %arg9[%c2_34, %c1_35, %c0_36, %c0_37] : memref<3x4x8x32xbf16, #tpu.memory_space<vmem>>, vector<1x1x8x32xbf16>
    %45 = vector.shape_cast %44 : vector<1x1x8x32xbf16> to vector<8x32xbf16>
    %46 = vector.shape_cast %43 : vector<8x32xbf16> to vector<1x1x8x32xbf16>
    tpu.vector_store %arg9[%c2_34, %c1_35, %c0_36, %c0_37], %46 {strides = array<i32>} : memref<3x4x8x32xbf16, #tpu.memory_space<vmem>>, vector<1x1x8x32xbf16>,
    %47 = vector.extract_strided_slice %22 {offsets = [0, 64], sizes = [8, 32], strides = [1, 1]} : vector<8x384xbf16> to vector<8x32xbf16>
    %c0_38 = arith.constant 0 : index
    %c2_39 = arith.constant 2 : index
    %c0_40 = arith.constant 0 : index
    %c0_41 = arith.constant 0 : index
    %48 = vector.load %arg9[%c0_38, %c2_39, %c0_40, %c0_41] : memref<3x4x8x32xbf16, #tpu.memory_space<vmem>>, vector<1x1x8x32xbf16>
    %49 = vector.shape_cast %48 : vector<1x1x8x32xbf16> to vector<8x32xbf16>
    %50 = vector.shape_cast %47 : vector<8x32xbf16> to vector<1x1x8x32xbf16>
    tpu.vector_store %arg9[%c0_38, %c2_39, %c0_40, %c0_41], %50 {strides = array<i32>} : memref<3x4x8x32xbf16, #tpu.memory_space<vmem>>, vector<1x1x8x32xbf16>,
    %51 = vector.extract_strided_slice %22 {offsets = [0, 192], sizes = [8, 32], strides = [1, 1]} : vector<8x384xbf16> to vector<8x32xbf16>
    %c1_42 = arith.constant 1 : index
    %c2_43 = arith.constant 2 : index
    %c0_44 = arith.constant 0 : index
    %c0_45 = arith.constant 0 : index
    %52 = vector.load %arg9[%c1_42, %c2_43, %c0_44, %c0_45] : memref<3x4x8x32xbf16, #tpu.memory_space<vmem>>, vector<1x1x8x32xbf16>
    %53 = vector.shape_cast %52 : vector<1x1x8x32xbf16> to vector<8x32xbf16>
    %54 = vector.shape_cast %51 : vector<8x32xbf16> to vector<1x1x8x32xbf16>
    tpu.vector_store %arg9[%c1_42, %c2_43, %c0_44, %c0_45], %54 {strides = array<i32>} : memref<3x4x8x32xbf16, #tpu.memory_space<vmem>>, vector<1x1x8x32xbf16>,
    %55 = vector.extract_strided_slice %22 {offsets = [0, 320], sizes = [8, 32], strides = [1, 1]} : vector<8x384xbf16> to vector<8x32xbf16>
    %c2_46 = arith.constant 2 : index
    %c2_47 = arith.constant 2 : index
    %c0_48 = arith.constant 0 : index
    %c0_49 = arith.constant 0 : index
    %56 = vector.load %arg9[%c2_46, %c2_47, %c0_48, %c0_49] : memref<3x4x8x32xbf16, #tpu.memory_space<vmem>>, vector<1x1x8x32xbf16>
    %57 = vector.shape_cast %56 : vector<1x1x8x32xbf16> to vector<8x32xbf16>
    %58 = vector.shape_cast %55 : vector<8x32xbf16> to vector<1x1x8x32xbf16>
    tpu.vector_store %arg9[%c2_46, %c2_47, %c0_48, %c0_49], %58 {strides = array<i32>} : memref<3x4x8x32xbf16, #tpu.memory_space<vmem>>, vector<1x1x8x32xbf16>,
    %59 = vector.extract_strided_slice %22 {offsets = [0, 96], sizes = [8, 32], strides = [1, 1]} : vector<8x384xbf16> to vector<8x32xbf16>
    %c0_50 = arith.constant 0 : index
    %c3 = arith.constant 3 : index
    %c0_51 = arith.constant 0 : index
    %c0_52 = arith.constant 0 : index
    %60 = vector.load %arg9[%c0_50, %c3, %c0_51, %c0_52] : memref<3x4x8x32xbf16, #tpu.memory_space<vmem>>, vector<1x1x8x32xbf16>
    %61 = vector.shape_cast %60 : vector<1x1x8x32xbf16> to vector<8x32xbf16>
    %62 = vector.shape_cast %59 : vector<8x32xbf16> to vector<1x1x8x32xbf16>
    tpu.vector_store %arg9[%c0_50, %c3, %c0_51, %c0_52], %62 {strides = array<i32>} : memref<3x4x8x32xbf16, #tpu.memory_space<vmem>>, vector<1x1x8x32xbf16>,
    %63 = vector.extract_strided_slice %22 {offsets = [0, 224], sizes = [8, 32], strides = [1, 1]} : vector<8x384xbf16> to vector<8x32xbf16>
    %c1_53 = arith.constant 1 : index
    %c3_54 = arith.constant 3 : index
    %c0_55 = arith.constant 0 : index
    %c0_56 = arith.constant 0 : index
    %64 = vector.load %arg9[%c1_53, %c3_54, %c0_55, %c0_56] : memref<3x4x8x32xbf16, #tpu.memory_space<vmem>>, vector<1x1x8x32xbf16>
    %65 = vector.shape_cast %64 : vector<1x1x8x32xbf16> to vector<8x32xbf16>
    %66 = vector.shape_cast %63 : vector<8x32xbf16> to vector<1x1x8x32xbf16>
    tpu.vector_store %arg9[%c1_53, %c3_54, %c0_55, %c0_56], %66 {strides = array<i32>} : memref<3x4x8x32xbf16, #tpu.memory_space<vmem>>, vector<1x1x8x32xbf16>,
    %67 = vector.extract_strided_slice %22 {offsets = [0, 352], sizes = [8, 32], strides = [1, 1]} : vector<8x384xbf16> to vector<8x32xbf16>
    %c2_57 = arith.constant 2 : index
    %c3_58 = arith.constant 3 : index
    %c0_59 = arith.constant 0 : index
    %c0_60 = arith.constant 0 : index
    %68 = vector.load %arg9[%c2_57, %c3_58, %c0_59, %c0_60] : memref<3x4x8x32xbf16, #tpu.memory_space<vmem>>, vector<1x1x8x32xbf16>
    %69 = vector.shape_cast %68 : vector<1x1x8x32xbf16> to vector<8x32xbf16>
    %70 = vector.shape_cast %67 : vector<8x32xbf16> to vector<1x1x8x32xbf16>
    tpu.vector_store %arg9[%c2_57, %c3_58, %c0_59, %c0_60], %70 {strides = array<i32>} : memref<3x4x8x32xbf16, #tpu.memory_space<vmem>>, vector<1x1x8x32xbf16>,
    %c0_61 = arith.constant 0 : index
    %c0_62 = arith.constant 0 : index
    %c0_63 = arith.constant 0 : index
    %c0_64 = arith.constant 0 : index
    %71 = vector.load %arg9[%c0_61, %c0_62, %c0_63, %c0_64] : memref<3x4x8x32xbf16, #tpu.memory_space<vmem>>, vector<1x4x8x32xbf16>
    %72 = vector.shape_cast %71 : vector<1x4x8x32xbf16> to vector<4x8x32xbf16>
    %c1_65 = arith.constant 1 : index
    %c0_66 = arith.constant 0 : index
    %c0_67 = arith.constant 0 : index
    %c0_68 = arith.constant 0 : index
    %73 = vector.load %arg9[%c1_65, %c0_66, %c0_67, %c0_68] : memref<3x4x8x32xbf16, #tpu.memory_space<vmem>>, vector<1x4x8x32xbf16>
    %74 = vector.shape_cast %73 : vector<1x4x8x32xbf16> to vector<4x8x32xbf16>
    %c2_69 = arith.constant 2 : index
    %c0_70 = arith.constant 0 : index
    %c0_71 = arith.constant 0 : index
    %c0_72 = arith.constant 0 : index
    %75 = vector.load %arg9[%c2_69, %c0_70, %c0_71, %c0_72] : memref<3x4x8x32xbf16, #tpu.memory_space<vmem>>, vector<1x4x8x32xbf16>
    %76 = vector.shape_cast %75 : vector<1x4x8x32xbf16> to vector<4x8x32xbf16>
    "tpu.trace_start"() <{level = 10 : i32, message = "hqd,hkd->hqk"}> : () -> ()
    %cst_73 = arith.constant dense<0.000000e+00> : vector<4x8x8xf32>
    %77 = tpu.matmul %72, %74, %cst_73 {dimension_numbers = #tpu.dot_dimension_numbers<[2], [2], [1], [1], [0, 0, 0, 1, 1, 1], [0], [0]>} : vector<4x8x32xbf16>, vector<4x8x32xbf16>, vector<4x8x8xf32> -> vector<4x8x8xf32>
    "tpu.trace_stop"() : () -> ()
    %cst_74 = arith.constant 0.176776692 : f32
    %78 = vector.broadcast %cst_74 : f32 to vector<4x8x8xf32>
    %79 = arith.mulf %77, %78 : vector<4x8x8xf32>
    %80 = tpu.iota {dimensions = array<i32: 0>} : vector<8x8xi32>
    %81 = tpu.iota {dimensions = array<i32: 1>} : vector<8x8xi32>
    %82 = arith.cmpi sle, %81, %80 : vector<8x8xi32>
    %83 = vector.shape_cast %82 : vector<8x8xi1> to vector<1x8x8xi1>
    %cst_75 = arith.constant -1.000000e+30 : f32
    %84 = vector.shape_cast %83 : vector<1x8x8xi1> to vector<1x8x8xi1>
    %85 = vector.broadcast %84 : vector<1x8x8xi1> to vector<4x8x8xi1>
    %86 = vector.broadcast %cst_75 : f32 to vector<4x8x8xf32>
    %87 = arith.select %85, %79, %86 : vector<4x8x8xi1>, vector<4x8x8xf32>
    %cst_76 = arith.constant dense<0xFF800000> : vector<4x8xf32>
    %88 = vector.multi_reduction <maximumf>, %87, %cst_76 [2] : vector<4x8x8xf32> to vector<4x8xf32>
    %89 = vector.shape_cast %88 : vector<4x8xf32> to vector<4x8x1xf32>
    %90 = vector.broadcast %89 : vector<4x8x1xf32> to vector<4x8x8xf32>
    %91 = arith.subf %87, %90 : vector<4x8x8xf32>
    %92 = math.exp %91 : vector<4x8x8xf32>
    %cst_77 = arith.constant dense<0.000000e+00> : vector<4x8xf32>
    %93 = vector.multi_reduction <add>, %92, %cst_77 [2] : vector<4x8x8xf32> to vector<4x8xf32>
    %94 = vector.shape_cast %93 : vector<4x8xf32> to vector<4x8x1xf32>
    %95 = tpu.reciprocal %94 {approx = true} : vector<4x8x1xf32> -> vector<4x8x1xf32>
    %96 = vector.broadcast %95 : vector<4x8x1xf32> to vector<4x8x8xf32>
    %97 = arith.mulf %92, %96 : vector<4x8x8xf32>
    %98 = arith.truncf %97 : vector<4x8x8xf32> to vector<4x8x8xbf16>
    "tpu.trace_start"() <{level = 10 : i32, message = "hqk,hkd->hqd"}> : () -> ()
    %cst_78 = arith.constant dense<0.000000e+00> : vector<4x8x32xf32>
    %99 = tpu.matmul %98, %76, %cst_78 {dimension_numbers = #tpu.dot_dimension_numbers<[2], [1], [1], [2], [0, 0, 0, 1, 1, 2], [0], [0]>} : vector<4x8x8xbf16>, vector<4x8x32xbf16>, vector<4x8x32xf32> -> vector<4x8x32xf32>
    "tpu.trace_stop"() : () -> ()
    %100 = vector.extract_strided_slice %99 {offsets = [0, 0, 0], sizes = [1, 8, 32], strides = [1, 1, 1]} : vector<4x8x32xf32> to vector<1x8x32xf32>
    %101 = vector.shape_cast %100 : vector<1x8x32xf32> to vector<8x32xf32>
    %c0_79 = arith.constant 0 : index
    %c0_80 = arith.constant 0 : index
    %102 = vector.load %arg10[%c0_79, %c0_80] : memref<8x128xf32, #tpu.memory_space<vmem>>, vector<8x32xf32>
    tpu.vector_store %arg10[%c0_79, %c0_80], %101 {strides = array<i32>} : memref<8x128xf32, #tpu.memory_space<vmem>>, vector<8x32xf32>,
    %103 = vector.extract_strided_slice %99 {offsets = [1, 0, 0], sizes = [1, 8, 32], strides = [1, 1, 1]} : vector<4x8x32xf32> to vector<1x8x32xf32>
    %104 = vector.shape_cast %103 : vector<1x8x32xf32> to vector<8x32xf32>
    %c0_81 = arith.constant 0 : index
    %c32 = arith.constant 32 : index
    %105 = vector.load %arg10[%c0_81, %c32] : memref<8x128xf32, #tpu.memory_space<vmem>>, vector<8x32xf32>
    tpu.vector_store %arg10[%c0_81, %c32], %104 {strides = array<i32>} : memref<8x128xf32, #tpu.memory_space<vmem>>, vector<8x32xf32>,
    %106 = vector.extract_strided_slice %99 {offsets = [2, 0, 0], sizes = [1, 8, 32], strides = [1, 1, 1]} : vector<4x8x32xf32> to vector<1x8x32xf32>
    %107 = vector.shape_cast %106 : vector<1x8x32xf32> to vector<8x32xf32>
    %c0_82 = arith.constant 0 : index
    %c64 = arith.constant 64 : index
    %108 = vector.load %arg10[%c0_82, %c64] : memref<8x128xf32, #tpu.memory_space<vmem>>, vector<8x32xf32>
    tpu.vector_store %arg10[%c0_82, %c64], %107 {strides = array<i32>} : memref<8x128xf32, #tpu.memory_space<vmem>>, vector<8x32xf32>,
    %109 = vector.extract_strided_slice %99 {offsets = [3, 0, 0], sizes = [1, 8, 32], strides = [1, 1, 1]} : vector<4x8x32xf32> to vector<1x8x32xf32>
    %110 = vector.shape_cast %109 : vector<1x8x32xf32> to vector<8x32xf32>
    %c0_83 = arith.constant 0 : index
    %c96 = arith.constant 96 : index
    %111 = vector.load %arg10[%c0_83, %c96] : memref<8x128xf32, #tpu.memory_space<vmem>>, vector<8x32xf32>
    tpu.vector_store %arg10[%c0_83, %c96], %110 {strides = array<i32>} : memref<8x128xf32, #tpu.memory_space<vmem>>, vector<8x32xf32>,
    %c0_84 = arith.constant 0 : index
    %c0_85 = arith.constant 0 : index
    %112 = vector.load %arg10[%c0_84, %c0_85] : memref<8x128xf32, #tpu.memory_space<vmem>>, vector<8x128xf32>
    %113 = arith.truncf %112 : vector<8x128xf32> to vector<8x128xbf16>
    %cst_86 = arith.constant dense<0.000000e+00> : vector<8x128xf32>
    %114 = tpu.matmul %113, %4, %cst_86 {dimension_numbers = #tpu.dot_dimension_numbers<[1], [0], [0], [1], [0, 0, 1, 1], [], []>} : vector<8x128xbf16>, vector<128x128xbf16>, vector<8x128xf32> -> vector<8x128xf32>
    %115 = arith.addf %1, %114 : vector<8x128xf32>
    %116 = arith.mulf %115, %115 : vector<8x128xf32>
    %cst_87 = arith.constant dense<0.000000e+00> : vector<8xf32>
    %117 = vector.multi_reduction <add>, %116, %cst_87 [1] : vector<8x128xf32> to vector<8xf32>
    %118 = vector.shape_cast %117 : vector<8xf32> to vector<8x1xf32>
    %cst_88 = arith.constant 1.280000e+02 : f32
    %119 = vector.broadcast %cst_88 : f32 to vector<8x1xf32>
    %120 = arith.divf %118, %119 : vector<8x1xf32>
    %cst_89 = arith.constant 9.99999997E-7 : f32
    %121 = vector.broadcast %cst_89 : f32 to vector<8x1xf32>
    %122 = arith.addf %120, %121 : vector<8x1xf32>
    %123 = math.rsqrt %122 : vector<8x1xf32>
    %124 = vector.broadcast %123 : vector<8x1xf32> to vector<8x128xf32>
    %125 = arith.mulf %115, %124 : vector<8x128xf32>
    %126 = vector.broadcast %5 : vector<1x128xf32> to vector<8x128xf32>
    %127 = arith.mulf %125, %126 : vector<8x128xf32>
    %128 = arith.truncf %127 : vector<8x128xf32> to vector<8x128xbf16>
    %cst_90 = arith.constant dense<0.000000e+00> : vector<8x512xf32>
    %129 = tpu.matmul %128, %6, %cst_90 {dimension_numbers = #tpu.dot_dimension_numbers<[1], [0], [0], [1], [0, 0, 1, 1], [], []>} : vector<8x128xbf16>, vector<128x512xbf16>, vector<8x512xf32> -> vector<8x512xf32>
    %130 = vector.extract_strided_slice %129 {offsets = [0, 0], sizes = [8, 256], strides = [1, 1]} : vector<8x512xf32> to vector<8x256xf32>
    %131 = vector.extract_strided_slice %129 {offsets = [0, 256], sizes = [8, 256], strides = [1, 1]} : vector<8x512xf32> to vector<8x256xf32>
    %132 = arith.negf %130 : vector<8x256xf32>
    %133 = math.exp %132 : vector<8x256xf32>
    %cst_91 = arith.constant 1.000000e+00 : f32
    %134 = vector.broadcast %cst_91 : f32 to vector<8x256xf32>
    %135 = arith.addf %134, %133 : vector<8x256xf32>
    %136 = arith.divf %134, %135 : vector<8x256xf32>
    %137 = arith.mulf %130, %136 : vector<8x256xf32>
    %138 = arith.mulf %137, %131 : vector<8x256xf32>
    %139 = arith.truncf %138 : vector<8x256xf32> to vector<8x256xbf16>
    %cst_92 = arith.constant dense<0.000000e+00> : vector<8x128xf32>
    %140 = tpu.matmul %139, %7, %cst_92 {dimension_numbers = #tpu.dot_dimension_numbers<[1], [0], [0], [1], [0, 0, 1, 1], [], []>} : vector<8x256xbf16>, vector<256x128xbf16>, vector<8x128xf32> -> vector<8x128xf32>
    %141 = arith.addf %115, %140 : vector<8x128xf32>
    %c0_93 = arith.constant 0 : index
    %c0_94 = arith.constant 0 : index
    %142 = vector.load %arg7[%c0_93, %c0_94] : memref<1x128xf32, #tpu.memory_space<vmem>>, vector<1x128xf32>
    %143 = arith.mulf %141, %141 : vector<8x128xf32>
    %cst_95 = arith.constant dense<0.000000e+00> : vector<8xf32>
    %144 = vector.multi_reduction <add>, %143, %cst_95 [1] : vector<8x128xf32> to vector<8xf32>
    %145 = vector.shape_cast %144 : vector<8xf32> to vector<8x1xf32>
    %cst_96 = arith.constant 1.280000e+02 : f32
    %146 = vector.broadcast %cst_96 : f32 to vector<8x1xf32>
    %147 = arith.divf %145, %146 : vector<8x1xf32>
    %cst_97 = arith.constant 9.99999997E-7 : f32
    %148 = vector.broadcast %cst_97 : f32 to vector<8x1xf32>
    %149 = arith.addf %147, %148 : vector<8x1xf32>
    %150 = math.rsqrt %149 : vector<8x1xf32>
    %151 = vector.broadcast %150 : vector<8x1xf32> to vector<8x128xf32>
    %152 = arith.mulf %141, %151 : vector<8x128xf32>
    %153 = vector.broadcast %142 : vector<1x128xf32> to vector<8x128xf32>
    %154 = arith.mulf %152, %153 : vector<8x128xf32>
    %155 = arith.truncf %154 : vector<8x128xf32> to vector<8x128xbf16>
    %c0_98 = arith.constant 0 : index
    %c0_99 = arith.constant 0 : index
    %156 = vector.load %arg8[%c0_98, %c0_99] : memref<8x128xbf16, #tpu.memory_space<vmem>>, vector<8x128xbf16>
    tpu.vector_store %arg8[%c0_98, %c0_99], %155 {strides = array<i32>} : memref<8x128xbf16, #tpu.memory_space<vmem>>, vector<8x128xbf16>,
    return
  }
}

</mosaic_0001>

<bundles_post_ra>
// kernel: tpu_custom_call.1
= control target key start
LH: loop header
LB: loop body
LE: loop exit
PB: predicated region body
PF: predicated region fallthrough
CT: control target
= control target key end

     0   :  { %13 = vsyncpa [#allocation5], 0  ;;  %s2309_s0 = inlined_call_operand.hbm [shape: bf16[8,128], index: 0, kind: input, shape index: {}]   ;;  %s2310_s1 = inlined_call_operand.vmem [shape: f32[1,128], index: 1, kind: input, shape index: {}]   ;;  %s2311_s2 = inlined_call_operand.hbm [shape: bf16[128,384], index: 2, kind: input, shape index: {}]   ;;  %s2312_s3 = inlined_call_operand.hbm [shape: bf16[128,128], index: 3, kind: input, shape index: {}]   ;;  %s2313_s4 = inlined_call_operand.vmem [shape: f32[1,128], index: 4, kind: input, shape index: {}]   ;;  %s2314_s5 = inlined_call_operand.hbm [shape: bf16[128,512], index: 5, kind: input, shape index: {}]   ;;  %s2315_s6 = inlined_call_operand.hbm [shape: bf16[256,128], index: 6, kind: input, shape index: {}]   ;;  %s2316_s7 = inlined_call_operand.vmem [shape: f32[1,128], index: 7, kind: input, shape index: {}]   ;;  %s2317_s8 = inlined_call_operand.hbm [shape: bf16[8,128], index: 8, kind: output, shape index: {}]  }
   0x1   :  { %14 = vsyncpa [#allocation8], 0 }
   0x2   :  { %15 = vsyncpa [#allocation11], 0 }
   0x3   :  { %16 = vsyncpa [#allocation6], 0  ;;  %s2037_s27 = smov [#allocation7]   ;;  %s1897_s9 = scalar_lea.hbm %s2311_s2, 3072 }
   0x4   :  { %s34_s28 = sshll.u32 %s2037_s27, 4  ;;  %p1898_p0 = scmp.ne.s32.totalorder %s2311_s2, %s1897_s9  ;;  %s35_s28 = int_to_ptr.vmem [resolvable:$true] %s34_s28 }
   0x5   :  { %p1901_p1 = scmp.lt.u32.totalorder %s1897_s9, %s2311_s2 }
   0x7   :  { %p1903_p2 = pnand %p1901_p1, %p1898_p0 }
   0x9   :  { %1906 = shalt.err (!%p1903_p2)
}
   0xa   :  { %s1907_s14 = scalar_lea.vmem %s35_s28, 3072  ;;  %p1912_p4 = scmp.lt.s32.totalorder %s35_s28, %s35_s28 }
   0xb   :  { %p1908_p3 = scmp.ne.s32.totalorder %s35_s28, %s1907_s14  ;;  %p1913_p5 = scmp.lt.s32.totalorder %s1907_s14, %s1907_s14 }
   0xd   :  { %p1914_p6 = por %p1913_p5, %p1912_p4 }
   0xf   :  { %p1915_p7 = pnand %p1914_p6, %p1908_p3 }
  0x11   :  { %1918 = shalt.err (!%p1915_p7)
}
  0x12   :  { %s2038_s15 = smov 192   ;;  %s2039_s16 = smov 12  }
  0x13   :  { %40 = dma.hbm_to_vmem [thread:$0]  %s2311_s2, 3072, %s35_s28, [#allocation8], %s2038_s15, %s2038_s15, %s2039_s16  }
  0x14   :  { %s2040_s19 = smov [#allocation10]   ;;  %s1919_s23 = scalar_lea.hbm %s2314_s5, 4096 }
  0x15   :  { %s60_s20 = sshll.u32 %s2040_s19, 4  ;;  %p1920_p8 = scmp.ne.s32.totalorder %s2314_s5, %s1919_s23  ;;  %s61_s20 = int_to_ptr.vmem [resolvable:$true] %s60_s20 }
  0x16   :  { %p1923_p9 = scmp.lt.u32.totalorder %s1919_s23, %s2314_s5 }
  0x18   :  { %p1925_p10 = pnand %p1923_p9, %p1920_p8 }
  0x1a   :  { %1928 = shalt.err (!%p1925_p10)
}
  0x1b   :  { %s1929_s29 = scalar_lea.vmem %s61_s20, 4096  ;;  %p1934_p12 = scmp.lt.s32.totalorder %s61_s20, %s61_s20 }
  0x1c   :  { %p1930_p11 = scmp.ne.s32.totalorder %s61_s20, %s1929_s29  ;;  %p1935_p13 = scmp.lt.s32.totalorder %s1929_s29, %s1929_s29 }
  0x1e   :  { %p1936_p0 = por %p1935_p13, %p1934_p12 }
  0x20   :  { %p1937_p1 = pnand %p1936_p0, %p1930_p11 }
  0x22   :  { %1940 = shalt.err (!%p1937_p1)
}
  0x23   :  { %s2041_s2 = smov 256   ;;  %s2042_s28 = smov 16  }
  0x24   :  { %66 = dma.hbm_to_vmem [thread:$0]  %s2314_s5, 4096, %s61_s20, [#allocation11], %s2041_s2, %s2041_s2, %s2042_s28  }
  0x25   :  { %s2043_s10 = smov [#allocation4]   ;;  %s2044_s12 = smov [#allocation9]  }
  0x26   :  { %s23_s11 = sshll.u32 %s2043_s10, 4  ;;  %s46_s13 = sshll.u32 %s2044_s12, 4  ;;  %s24_s11 = int_to_ptr.vmem [resolvable:$true] %s23_s11  ;;  %s2123_s13 = int_to_ptr.vmem [resolvable:$true] %s46_s13 }
  0x27   :  { %s1941_s16 = scalar_lea.hbm %s2309_s0, 64 }
  0x28   :  { %p1942_p2 = scmp.ne.s32.totalorder %s2309_s0, %s1941_s16  ;;  %p1945_p3 = scmp.lt.u32.totalorder %s1941_s16, %s2309_s0 }
  0x2a   :  { %p1947_p4 = pnand %p1945_p3, %p1942_p2 }
  0x2c   :  { %1950 = shalt.err (!%p1947_p4)
}
  0x2d   :  { %s1951_s5 = scalar_lea.vmem %s24_s11, 64  ;;  %p1956_p6 = scmp.lt.s32.totalorder %s24_s11, %s24_s11 }
  0x2e   :  { %p1952_p5 = scmp.ne.s32.totalorder %s24_s11, %s1951_s5  ;;  %p1957_p7 = scmp.lt.s32.totalorder %s1951_s5, %s1951_s5 }
  0x30   :  { %p1958_p8 = por %p1957_p7, %p1956_p6 }
  0x32   :  { %p1959_p9 = pnand %p1958_p8, %p1952_p5 }
  0x34   :  { %1962 = shalt.err (!%p1959_p9)
}
  0x35   :  { %26 = dma.hbm_to_vmem [thread:$0]  %s2309_s0, 64, %s24_s11, [#allocation5]  }
  0x36   :  { %s1963_s25 = scalar_lea.hbm %s2312_s3, 1024 }
  0x37   :  { %p1964_p10 = scmp.ne.s32.totalorder %s2312_s3, %s1963_s25  ;;  %p1967_p11 = scmp.lt.u32.totalorder %s1963_s25, %s2312_s3 }
  0x39   :  { %p1969_p12 = pnand %p1967_p11, %p1964_p10 }
  0x3b   :  { %1972 = shalt.err (!%p1969_p12)
}
  0x3c   :  { %s1973_s28 = scalar_lea.vmem %s2123_s13, 1024  ;;  %p1978_p0 = scmp.lt.s32.totalorder %s2123_s13, %s2123_s13 }
  0x3d   :  { %p1974_p13 = scmp.ne.s32.totalorder %s2123_s13, %s1973_s28  ;;  %p1979_p1 = scmp.lt.s32.totalorder %s1973_s28, %s1973_s28 }
  0x3f   :  { %p1980_p2 = por %p1979_p1, %p1978_p0 }
  0x41   :  { %p1981_p3 = pnand %p1980_p2, %p1974_p13 }
  0x43   :  { %1984 = shalt.err (!%p1981_p3)
}
  0x44   :  { %s2045_s0 = smov 64   ;;  %s2046_s30 = smov 4  }
  0x45   :  { %52 = dma.hbm_to_vmem [thread:$0]  %s2312_s3, 1024, %s2123_s13, [#allocation8], %s2045_s0, %s2045_s0, %s2046_s30  }
  0x46   :  { %s2047_s11 = smov [#allocation12]   ;;  %s1985_s16 = scalar_lea.hbm %s2315_s6, 2048 }
  0x47   :  { %s72_s12 = sshll.u32 %s2047_s11, 4  ;;  %p1986_p4 = scmp.ne.s32.totalorder %s2315_s6, %s1985_s16  ;;  %s73_s12 = int_to_ptr.vmem [resolvable:$true] %s72_s12 }
  0x48   :  { %p1989_p5 = scmp.lt.u32.totalorder %s1985_s16, %s2315_s6 }
  0x4a   :  { %p1991_p6 = pnand %p1989_p5, %p1986_p4 }
  0x4c   :  { %1994 = shalt.err (!%p1991_p6)
}
  0x4d   :  { %s1995_s5 = scalar_lea.vmem %s73_s12, 2048  ;;  %p2000_p8 = scmp.lt.s32.totalorder %s73_s12, %s73_s12 }
  0x4e   :  { %p1996_p7 = scmp.ne.s32.totalorder %s73_s12, %s1995_s5  ;;  %p2001_p9 = scmp.lt.s32.totalorder %s1995_s5, %s1995_s5 }
  0x50   :  { %p2002_p10 = por %p2001_p9, %p2000_p8 }
  0x52   :  { %p2003_p11 = pnand %p2002_p10, %p1996_p7 }
  0x54   :  { %2006 = shalt.err (!%p2003_p11)
}
  0x55   :  { %78 = dma.hbm_to_vmem [thread:$0]  %s2315_s6, 2048, %s73_s12, [#allocation11], %s2045_s0, %s2045_s0, %s2046_s30  }
  0x56   :  { %2029 = dma.done.wait [#allocation5], 64  }
  0x57   :  { %2030 = vsyncadd [#allocation5], 4294967232 }
  0x58   :  { %2031 = dma.done.wait [#allocation8], 4096  }
  0x59   :  { %2032 = vsyncadd [#allocation8], 4294963200 }
  0x5a   :  { %2033 = dma.done.wait [#allocation11], 6144  }
  0x5b   :  { %2034 = vsyncadd [#allocation11], 4294961152  ;;  %v2048_v0 = vmov 0.0   ;;  %v97_v1 = vld [vmem:[#allocation4] sm:$0xf]  ;;  %v2049_v25 = vmov 0  }
  0x5c   :  { %1658 = vmatprep.subr.bf16.mxu1 %v2048_v0  ;;  %v2171_v2 = vunpack.c.l.bf16 %v97_v1  ;;  %v1763_v3 = vld [vmem:[#allocation7 + $0x4] ss:$12 sps:$4 sm:$0xff]   ;;  %v1765_v4 = vld [vmem:[#allocation7] ss:$12 sps:$4 sm:$0xff]   ;;  %v1766_v5 = vld [vmem:[#allocation7 + $0x8] ss:$12 sps:$4 sm:$0xff]   ;;  %389 = vmatprep.mubr.bf16.mxu0 %v2049_v25 }
  0x5d   :  { %357 = vmatprep.subr.bf16.mxu0 %v1763_v3  ;;  %v1767_v7 = vld [vmem:[#allocation7 + $0x1c] ss:$12 sps:$4 sm:$0xff]   ;;  %v1769_v8 = vld [vmem:[#allocation7 + $0x18] ss:$12 sps:$4 sm:$0xff]   ;;  %1659 = vmatpush3.bf16.msra.mxu1 %v1766_v5  ;;  %v1770_v9 = vld [vmem:[#allocation7 + $0x20] ss:$12 sps:$4 sm:$0xff]  }
  0x5e   :  { %v213_v6 = vmul.f32 %v2171_v2, %v2171_v2  ;;  %358 = vmatpush1.bf16.msra.mxu0 %v1765_v4  ;;  %v1771_v10 = vld [vmem:[#allocation7 + $0x34] ss:$12 sps:$4 sm:$0xff]   ;;  %1660 = vmatprep.subr.bf16.mxu1 %v2048_v0  ;;  %v1773_v11 = vld [vmem:[#allocation7 + $0x30] ss:$12 sps:$4 sm:$0xff]   ;;  %v1774_v12 = vld [vmem:[#allocation7 + $0x38] ss:$12 sps:$4 sm:$0xff]  }
  0x5f   :  { %359 = vmatprep.subr.bf16.mxu0 %v1767_v7  ;;  %v1775_v13 = vld [vmem:[#allocation7 + $0x4c] ss:$12 sps:$4 sm:$0xff]   ;;  %v1777_v14 = vld [vmem:[#allocation7 + $0x48] ss:$12 sps:$4 sm:$0xff]   ;;  %v1778_v15 = vld [vmem:[#allocation7 + $0x50] ss:$12 sps:$4 sm:$0xff]  }
  0x60   :  { %214 = vadd.xlane.f32.xlu0 %v213_v6  ;;  %v1779_v16 = vld [vmem:[#allocation7 + $0x64] ss:$12 sps:$4 sm:$0xff]   ;;  %v1781_v17 = vld [vmem:[#allocation7 + $0x60] ss:$12 sps:$4 sm:$0xff]   ;;  %v1782_v18 = vld [vmem:[#allocation7 + $0x68] ss:$12 sps:$4 sm:$0xff]   ;;  %v702_v6 = vlaneseq }
  0x61   :  { %1661 = vmatpush3.bf16.msra.mxu1 %v1770_v9  ;;  %v1783_v19 = vld [vmem:[#allocation7 + $0x7c] ss:$12 sps:$4 sm:$0xff]   ;;  %v1785_v20 = vld [vmem:[#allocation7 + $0x78] ss:$12 sps:$4 sm:$0xff]   ;;  %v1786_v21 = vld [vmem:[#allocation7 + $0x80] ss:$12 sps:$4 sm:$0xff]  }
  0x62   :  { %360 = vmatpush1.bf16.msra.mxu0 %v1769_v8  ;;  %1662 = vmatprep.subr.bf16.mxu1 %v2048_v0  ;;  %v1787_v22 = vld [vmem:[#allocation7 + $0x94] ss:$12 sps:$4 sm:$0xff]   ;;  %v1789_v23 = vld [vmem:[#allocation7 + $0x90] ss:$12 sps:$4 sm:$0xff]   ;;  %v1790_v24 = vld [vmem:[#allocation7 + $0x98] ss:$12 sps:$4 sm:$0xff]  }
  0x63   :  { %361 = vmatprep.subr.bf16.mxu0 %v1771_v10  ;;  %vm2050_vm0 = vmmov 0   ;;  %v1791_v26 = vld [vmem:[#allocation7 + $0xac] ss:$12 sps:$4 sm:$0xff]   ;;  %v1793_v27 = vld [vmem:[#allocation7 + $0xa8] ss:$12 sps:$4 sm:$0xff]   ;;  %vm441_vm1 = vcmask 257024  }
  0x64   :  { %1674 = vmatprep.mubr.msk.bf16.mxu1 %vm2050_vm0, %v2048_v0  ;;  %v1794_v28 = vld [vmem:[#allocation7 + $0xb0] ss:$12 sps:$4 sm:$0xff]   ;;  %v1503_v33 = vld [vmem:[%s2310_s1] ss:$0 sm:$0xff]  ;;  %s2051_s1 = smov 96   ;;  %vm513_vm2 = vcmask 261120  }
  0x65   :  { %1663 = vmatpush3.bf16.msra.mxu1 %v1774_v12  ;;  %s2052_s22 = smov 32   ;;  %vm765_vm3 = vcmask 1043456   ;;  %v703_v7 = vshrl.u32 %v702_v6, 7  ;;  %v705_v8 = vand.u32 127, %v702_v6  ;;  %vm713_vm5 = vcmask 64512   ;;  %s2053_s26 = smov [#allocation13]  }
  0x66   :  { %362 = vmatpush1.bf16.msra.mxu0 %v1773_v11  ;;  %1664 = vmatprep.subr.bf16.mxu1 %v2048_v0  ;;  %vm952_vm6 = vcmask 523520   ;;  %vm958_vm7 = vcmask 785920   ;;  %vm964_vm8 = vcmask 1048320   ;;  %s1492_s27 = sshll.u32 %s2053_s26, 4  ;;  %s1493_s27 = int_to_ptr.vmem [resolvable:$true] %s1492_s27 }
  0x67   :  { %363 = vmatprep.subr.bf16.mxu0 %v1775_v13  ;;  %vm706_vm4 = vcmp.le.s32.totalorder %v705_v8, %v703_v7  ;;  %s2007_s29 = scalar_lea.vmem %s1493_s27, 64  ;;  %p2012_p13 = scmp.lt.s32.totalorder %s1493_s27, %s1493_s27 }
  0x68   :  { %p2008_p12 = scmp.ne.s32.totalorder %s1493_s27, %s2007_s29  ;;  %p2013_p0 = scmp.lt.s32.totalorder %s2007_s29, %s2007_s29 }
  0x69   :  { %1665 = vmatpush3.bf16.msra.mxu1 %v1778_v15 }
  0x6a   :  { %364 = vmatpush1.bf16.msra.mxu0 %v1777_v14  ;;  %1666 = vmatprep.subr.bf16.mxu1 %v2048_v0  ;;  %p2014_p1 = por %p2013_p0, %p2012_p13 }
  0x6b   :  { %365 = vmatprep.subr.bf16.mxu0 %v1779_v16 }
  0x6c   :  { %p2015_p2 = pnand %p2014_p1, %p2008_p12 }
  0x6d   :  { %1667 = vmatpush3.bf16.msra.mxu1 %v1782_v18 }
  0x6e   :  { %366 = vmatpush1.bf16.msra.mxu0 %v1781_v17  ;;  %1668 = vmatprep.subr.bf16.mxu1 %v2048_v0 }
  0x6f   :  { %367 = vmatprep.subr.bf16.mxu0 %v1783_v19 }
  0x71   :  { %1669 = vmatpush3.bf16.msra.mxu1 %v1786_v21 }
  0x72   :  { %368 = vmatpush1.bf16.msra.mxu0 %v1785_v20  ;;  %1670 = vmatprep.subr.bf16.mxu1 %v2048_v0 }
  0x73   :  { %369 = vmatprep.subr.bf16.mxu0 %v1787_v22 }
  0x75   :  { %1671 = vmatpush3.bf16.msra.mxu1 %v1790_v24 }
  0x76   :  { %370 = vmatpush1.bf16.msra.mxu0 %v1789_v23  ;;  %1672 = vmatprep.subr.bf16.mxu1 %v2048_v0 }
  0x77   :  { %371 = vmatprep.subr.bf16.mxu0 %v1791_v26 }
  0x79   :  { %1673 = vmatpush3.bf16.msra.mxu1 %v1794_v28 }
  0x7a   :  { %372 = vmatpush1.bf16.msra.mxu0 %v1793_v27  ;;  %1684 = vmatprep.subr.bf16.mxu1 %v2048_v0 }
  0x7b   :  { %1678 = vmatprep.subr.bf16.mxu0 %v2048_v0 }
  0xed   :  { %v215_v29 = vpop.xlane.xlu0 %214 }
  0xee   :  { %v217_v30 = vmul.f32 0.0078125, %v215_v29 }
  0xf0   :  { %v218_v31 = vadd.f32 1e-06, %v217_v30 }
  0xf2   :  { %1867 = vrsqrt.f32 %v218_v31 }
  0xfc   :  { %v1868_v32 = vpop.eup %1867 }
  0xfd   :  { %v220_v34 = vmul.f32 %v1868_v32, %v2171_v2 }
  0xff   :  { %v227_v35 = vmul.f32 %v1503_v33, %v220_v34 }
 0x101   :  { %v228_v36 = vpack.c.bf16 %v227_v35, %v227_v35 }
 0x103   :  { %390 = vmatmul.mubr.bf16.vlgmr.msra.gmra.mrb[0].mxu0 %v228_v36  ;;  %1675 = vmatmul.mubr.bf16.vlgmr.msra.gmra.mrb[0].mxu1 %v228_v36 }
 0x104   :  { %1680 = vmatprep.mubr.msk.bf16.mxu0 %vm2050_vm0, %v2048_v0  ;;  %1686 = vmatprep.mubr.msk.bf16.mxu1 %vm2050_vm0, %v2048_v0 }
 0x1d6   :  { %v391_v37 = vpop.f32.mrb[0].mxu0  ;;  %v432_v38 = vpop.f32.mrb[0].mxu1 }
 0x1d7   :  { %v438_v39 = vpack.c.bf16 %v391_v37, %v391_v37  ;;  %v2195_v40 = vpack.c.bf16 %v432_v38, %v432_v38  ;;  %v393_v41 = vpop.f32.mrb[1].mxu0  ;;  %v1676_v42 = vpop.f32.mrb[1].mxu1 }
 0x1d8   :  { %v439_v43 = vpack.c.bf16 %v393_v41, %v393_v41  ;;  %v395_v44 = vpop.f32.mrb[2].mxu0  ;;  %v435_v45 = vpop.f32.mrb[2].mxu1 }
 0x1d9   :  { %442 = vst.msk [vmem:[#allocation2] sm:$0xf] %vm441_vm1, %v438_v39  ;;  %446 = vst.msk [vmem:[#allocation2 + $0x20] sm:$0xf] %vm441_vm1, %v2195_v40  ;;  %v1677_v46 = vpop.f32.mrb[3].mxu1  ;;  %450 = vrot.lane.b32.xlu1 %v438_v39, %s2051_s1  ;;  %v396_v47 = vpop.f32.mrb[3].mxu0 }
 0x1da   :  { %444 = vst.msk [vmem:[#allocation2 + $0x10] sm:$0xf] %vm441_vm1, %v439_v43  ;;  %458 = vrot.lane.b32.xlu0 %v439_v43, %s2051_s1 }
 0x1dd   :  { %476 = vrot.lane.b32.xlu1 %v439_v43, %s2045_s0 }
 0x1e0   :  { %v501_v50 = vld [vmem:[#allocation2] sm:$0xf] }
 0x1e1   :  { %491 = vrot.lane.b32.xlu1 %v439_v43, %s2052_s22  ;;  %v505_v48 = vld [vmem:[#allocation2 + $0x10] sm:$0xf]  ;;  %v509_v1 = vld [vmem:[#allocation2 + $0x20] sm:$0xf] }
 0x1e2   :  { %v518_v49 = vsel %vm513_vm2, %v505_v48, 0  ;;  %v767_v4 = vsel %vm765_vm3, %v509_v1, 0 }
 0x1e3   :  { %1679 = vmatpush3.bf16.xpose.msra.mxu0 %v518_v49 }
 0x1e4   :  { %1690 = vmatprep.subr.bf16.mxu0 %v2048_v0 }
 0x1e5   :  { %471 = vrot.lane.b32.xlu1 %v438_v39, %s2045_s0 }
 0x1e9   :  { %486 = vrot.lane.b32.xlu1 %v438_v39, %s2052_s22 }
 0x1ea   :  { %1681 = vmatmul.mubr.msk.bf16.vlgmr.msra.gmra.mrb[4].mxu0 %vm513_vm2, %v501_v50 }
 0x1eb   :  { %1692 = vmatprep.mubr.msk.bf16.mxu0 %vm2050_vm0, %v2048_v0 }
 0x24b   :  { %v451_v51 = vpop.permute.xlu1 %450 }
 0x24c   :  { %454 = vst.msk [vmem:[#allocation2 + $0x4] sm:$0xf] %vm441_vm1, %v451_v51  ;;  %v459_v52 = vpop.permute.xlu0 %458 }
 0x24d   :  { %462 = vst.msk [vmem:[#allocation2 + $0x14] sm:$0xf] %vm441_vm1, %v459_v52 }
 0x24f   :  { %v477_v53 = vpop.permute.xlu1 %476 }
 0x250   :  { %480 = vst.msk [vmem:[#allocation2 + $0x18] sm:$0xf] %vm441_vm1, %v477_v53 }
 0x253   :  { %v492_v54 = vpop.permute.xlu1 %491  ;;  %v502_v62 = vld [vmem:[#allocation2 + $0x4] sm:$0xf] }
 0x254   :  { %495 = vst.msk [vmem:[#allocation2 + $0x1c] sm:$0xf] %vm441_vm1, %v492_v54  ;;  %v506_v55 = vld [vmem:[#allocation2 + $0x14] sm:$0xf] }
 0x255   :  { %v564_v56 = vsel %vm513_vm2, %v506_v55, 0 }
 0x256   :  { %1685 = vmatpush3.bf16.xpose.msra.mxu1 %v564_v56 }
 0x257   :  { %v472_v57 = vpop.permute.xlu1 %471  ;;  %v507_v58 = vld [vmem:[#allocation2 + $0x18] sm:$0xf]  ;;  %1696 = vmatprep.subr.bf16.mxu1 %v2048_v0 }
 0x258   :  { %475 = vst.msk [vmem:[#allocation2 + $0x8] sm:$0xf] %vm441_vm1, %v472_v57  ;;  %v610_v59 = vsel %vm513_vm2, %v507_v58, 0 }
 0x259   :  { %1691 = vmatpush3.bf16.xpose.msra.mxu0 %v610_v59 }
 0x25a   :  { %1702 = vmatprep.subr.bf16.mxu0 %v2048_v0 }
 0x25b   :  { %v487_v60 = vpop.permute.xlu1 %486  ;;  %v508_v61 = vld [vmem:[#allocation2 + $0x1c] sm:$0xf] }
 0x25c   :  { %490 = vst.msk [vmem:[#allocation2 + $0xc] sm:$0xf] %vm441_vm1, %v487_v60  ;;  %v656_v63 = vsel %vm513_vm2, %v508_v61, 0 }
 0x25d   :  { %1687 = vmatmul.mubr.msk.bf16.vlgmr.msra.gmra.mrb[4].mxu1 %vm513_vm2, %v502_v62 }
 0x25e   :  { %1697 = vmatpush3.bf16.xpose.msra.mxu1 %v656_v63  ;;  %1698 = vmatprep.mubr.msk.bf16.mxu1 %vm2050_vm0, %v2048_v0 }
 0x25f   :  { %v503_v3 = vld [vmem:[#allocation2 + $0x8] sm:$0xf]  ;;  %1708 = vmatprep.subr.bf16.mxu1 %v2048_v0 }
 0x260   :  { %1693 = vmatmul.mubr.msk.bf16.vlgmr.msra.gmra.mrb[8].mxu0 %vm513_vm2, %v503_v3 }
 0x261   :  { %1703 = vmatpush3.bf16.msra.mxu0 %v767_v4  ;;  %1704 = vmatprep.mubr.msk.bf16.mxu0 %vm2050_vm0, %v2048_v0 }
 0x262   :  { %1714 = vmatprep.subr.bf16.mxu0 %v2048_v0 }
 0x263   :  { %v504_v5 = vld [vmem:[#allocation2 + $0xc] sm:$0xf] }
 0x265   :  { %1699 = vmatmul.mubr.msk.bf16.vlgmr.msra.gmra.mrb[8].mxu1 %vm513_vm2, %v504_v5 }
 0x266   :  { %1710 = vmatprep.mubr.msk.bf16.mxu1 %vm2050_vm0, %v2048_v0 }
 0x2bd   :  { %v554_v9 = vpop.f32.mrb[4].mxu0 }
 0x2be   :  { %v698_v10 = vmul.f32 0.17677669, %v554_v9  ;;  %v1682_v11 = vpop.f32.mrb[5].mxu0 }
 0x2bf   :  { %v557_v12 = vpop.f32.mrb[6].mxu0 }
 0x2c0   :  { %v1683_v13 = vpop.f32.mrb[7].mxu0  ;;  %v709_v14 = vsel %vm706_vm4, %v698_v10, -1e+30 }
 0x2c1   :  { %v714_v15 = vsel %vm713_vm5, %v709_v14, -inf }
 0x2c2   :  { %715 = vmax.xlane.f32.xlu1 %v714_v15 }
 0x330   :  { %v600_v16 = vpop.f32.mrb[4].mxu1 }
 0x331   :  { %v699_v17 = vmul.f32 0.17677669, %v600_v16  ;;  %v1688_v18 = vpop.f32.mrb[5].mxu1 }
 0x332   :  { %v603_v19 = vpop.f32.mrb[6].mxu1 }
 0x333   :  { %v1689_v20 = vpop.f32.mrb[7].mxu1  ;;  %v646_v21 = vpop.f32.mrb[8].mxu0  ;;  %v710_v22 = vsel %vm706_vm4, %v699_v17, -1e+30 }
 0x334   :  { %v700_v23 = vmul.f32 0.17677669, %v646_v21  ;;  %v1694_v24 = vpop.f32.mrb[9].mxu0  ;;  %v717_v26 = vsel %vm713_vm5, %v710_v22, -inf  ;;  %v1795_v21 = vld [vmem:[#allocation9] sm:$0xff]  }
 0x335   :  { %718 = vmax.xlane.f32.xlu0 %v717_v26  ;;  %v649_v27 = vpop.f32.mrb[10].mxu0 }
 0x336   :  { %v1695_v28 = vpop.f32.mrb[11].mxu0  ;;  %v711_v29 = vsel %vm706_vm4, %v700_v23, -1e+30  ;;  %v1797_v23 = vld [vmem:[#allocation9 + $0x10] sm:$0xff]  }
 0x337   :  { %v720_v30 = vsel %vm713_vm5, %v711_v29, -inf }
 0x338   :  { %v692_v31 = vpop.f32.mrb[8].mxu1  ;;  %721 = vmax.xlane.f32.xlu1 %v720_v30  ;;  %v1799_v30 = vld [vmem:[#allocation9 + $0x20] sm:$0xff]  }
 0x339   :  { %v701_v32 = vmul.f32 0.17677669, %v692_v31  ;;  %v1700_v33 = vpop.f32.mrb[9].mxu1  ;;  %v1800_v31 = vld [vmem:[#allocation9 + $0x28] sm:$0xff]  }
 0x33a   :  { %v695_v34 = vpop.f32.mrb[10].mxu1 }
 0x33b   :  { %v1701_v35 = vpop.f32.mrb[11].mxu1  ;;  %v712_v36 = vsel %vm706_vm4, %v701_v32, -1e+30  ;;  %v1801_v32 = vld [vmem:[#allocation9 + $0x30] sm:$0xff]  }
 0x33c   :  { %v723_v37 = vsel %vm713_vm5, %v712_v36, -inf  ;;  %v1802_v35 = vld [vmem:[#allocation9 + $0x38] sm:$0xff]  }
 0x33d   :  { %724 = vmax.xlane.f32.xlu0 %v723_v37 }
 0x349   :  { %466 = vrot.lane.b32.xlu1 %v2195_v40, %s2051_s1 }
 0x34f   :  { %v716_v38 = vpop.xlane.xlu1 %715 }
 0x350   :  { %v726_v39 = vsub.f32 %v709_v14, %v716_v38 }
 0x352   :  { %v730_v41 = vmul.f32 1.442695, %v726_v39 }
 0x354   :  { %1869 = vpow2.f32 %v730_v41 }
 0x35e   :  { %v1870_v42 = vpop.eup %1869 }
 0x35f   :  { %v738_v43 = vsel %vm713_vm5, %v1870_v42, 0.0 }
 0x36d   :  { %739 = vadd.xlane.f32.xlu1 %v738_v43 }
 0x3c2   :  { %v719_v44 = vpop.xlane.xlu0 %718 }
 0x3c3   :  { %v727_v45 = vsub.f32 %v710_v22, %v719_v44  ;;  %v1796_v22 = vld [vmem:[#allocation9 + $0x8] sm:$0xff]  }
 0x3c5   :  { %v732_v46 = vmul.f32 1.442695, %v727_v45  ;;  %v722_v47 = vpop.xlane.xlu1 %721 }
 0x3c6   :  { %v728_v48 = vsub.f32 %v711_v29, %v722_v47  ;;  %v1798_v29 = vld [vmem:[#allocation9 + $0x18] sm:$0xff]  }
 0x3c7   :  { %1871 = vpow2.f32 %v732_v46 }
 0x3c8   :  { %v734_v49 = vmul.f32 1.442695, %v728_v48 }
 0x3c9   :  { %v467_v50 = vpop.permute.xlu1 %466 }
 0x3ca   :  { %1873 = vpow2.f32 %v734_v49  ;;  %470 = vst.msk [vmem:[#allocation2 + $0x24] sm:$0xf] %vm441_vm1, %v467_v50  ;;  %v725_v51 = vpop.xlane.xlu0 %724 }
 0x3cb   :  { %v729_v52 = vsub.f32 %v712_v36, %v725_v51  ;;  %v1803_v51 = vld [vmem:[#allocation10] ss:$16 sps:$4 sm:$0xff]  }
 0x3cd   :  { %v736_v53 = vmul.f32 1.442695, %v729_v52  ;;  %v1805_v52 = vld [vmem:[#allocation10 + $0x4] ss:$16 sps:$4 sm:$0xff]  }
 0x3cf   :  { %1875 = vpow2.f32 %v736_v53  ;;  %v1806_v53 = vld [vmem:[#allocation10 + $0x8] ss:$16 sps:$4 sm:$0xff]  }
 0x3d1   :  { %v1872_v54 = vpop.eup %1871  ;;  %v510_v55 = vld [vmem:[#allocation2 + $0x24] sm:$0xf] }
 0x3d2   :  { %v741_v56 = vsel %vm713_vm5, %v1872_v54, 0.0  ;;  %v813_v57 = vsel %vm765_vm3, %v510_v55, 0  ;;  %v1811_v55 = vld [vmem:[#allocation10 + $0x24] ss:$16 sps:$4 sm:$0xff]  }
 0x3d3   :  { %742 = vadd.xlane.f32.xlu0 %v741_v56  ;;  %1709 = vmatpush3.bf16.msra.mxu1 %v813_v57  ;;  %v1814_v56 = vld [vmem:[#allocation10 + $0x2c] ss:$16 sps:$4 sm:$0xff]   ;;  %v1809_v57 = vld [vmem:[#allocation10 + $0x20] ss:$16 sps:$4 sm:$0xff]  }
 0x3d4   :  { %v1874_v58 = vpop.eup %1873  ;;  %1720 = vmatprep.subr.bf16.mxu1 %v2048_v0 }
 0x3d5   :  { %v744_v59 = vsel %vm713_vm5, %v1874_v58, 0.0 }
 0x3d6   :  { %745 = vadd.xlane.f32.xlu1 %v744_v59  ;;  %v1817_v59 = vld [vmem:[#allocation10 + $0x44] ss:$16 sps:$4 sm:$0xff]  }
 0x3d9   :  { %v1876_v60 = vpop.eup %1875 }
 0x3da   :  { %v747_v61 = vsel %vm713_vm5, %v1876_v60, 0.0 }
 0x3db   :  { %748 = vadd.xlane.f32.xlu0 %v747_v61  ;;  %v1815_v61 = vld [vmem:[#allocation10 + $0x40] ss:$16 sps:$4 sm:$0xff]  }
 0x3e7   :  { %496 = vrot.lane.b32.xlu1 %v2195_v40, %s2052_s22 }
 0x3f1   :  { %481 = vrot.lane.b32.xlu0 %v2195_v40, %s2045_s0 }
 0x3fa   :  { %v740_v62 = vpop.xlane.xlu1 %739 }
 0x3fb   :  { %1877 = vrcp.f32 %v740_v62 }
 0x405   :  { %v1878_v63 = vpop.eup %1877 }
 0x406   :  { %v754_v1 = vmul.f32 %v1878_v63, %v1870_v42 }
 0x408   :  { %v758_v3 = vpack.c.bf16 %v754_v1, %v754_v1 }
 0x40a   :  { %1705 = vmatmul.mubr.msk.bf16.vlgmr.msra.gmra.mrb[12].mxu0 %vm713_vm5, %v758_v3 }
 0x40b   :  { %1716 = vmatprep.mubr.msk.bf16.mxu0 %vm2050_vm0, %v2048_v0 }
 0x460   :  { %v743_v4 = vpop.xlane.xlu0 %742 }
 0x461   :  { %1879 = vrcp.f32 %v743_v4 }
 0x463   :  { %v746_v5 = vpop.xlane.xlu1 %745 }
 0x464   :  { %1881 = vrcp.f32 %v746_v5 }
 0x467   :  { %v497_v6 = vpop.permute.xlu1 %496 }
 0x468   :  { %500 = vst.msk [vmem:[#allocation2 + $0x2c] sm:$0xf] %vm441_vm1, %v497_v6  ;;  %v749_v7 = vpop.xlane.xlu0 %748  ;;  %v1823_v6 = vld [vmem:[#allocation10 + $0x64] ss:$16 sps:$4 sm:$0xff]  }
 0x469   :  { %1883 = vrcp.f32 %v749_v7  ;;  %v1826_v7 = vld [vmem:[#allocation10 + $0x6c] ss:$16 sps:$4 sm:$0xff]  }
 0x46b   :  { %v1880_v40 = vpop.eup %1879 }
 0x46c   :  { %v755_v8 = vmul.f32 %v1880_v40, %v1872_v54  ;;  %v482_v9 = vpop.permute.xlu0 %481  ;;  %v1808_v54 = vld [vmem:[#allocation10 + $0xc] ss:$16 sps:$4 sm:$0xff]   ;;  %v1821_v40 = vld [vmem:[#allocation10 + $0x60] ss:$16 sps:$4 sm:$0xff]  }
 0x46d   :  { %485 = vst.msk [vmem:[#allocation2 + $0x28] sm:$0xf] %vm441_vm1, %v482_v9  ;;  %v1829_v9 = vld [vmem:[#allocation10 + $0x84] ss:$16 sps:$4 sm:$0xff]  }
 0x46e   :  { %v759_v10 = vpack.c.bf16 %v755_v8, %v755_v8  ;;  %v1882_v12 = vpop.eup %1881  ;;  %v1824_v8 = vld [vmem:[#allocation10 + $0x68] ss:$16 sps:$4 sm:$0xff]  }
 0x46f   :  { %v512_v11 = vld [vmem:[#allocation2 + $0x2c] sm:$0xf]  ;;  %v756_v15 = vmul.f32 %v1882_v12, %v1874_v58  ;;  %v1812_v58 = vld [vmem:[#allocation10 + $0x28] ss:$16 sps:$4 sm:$0xff]   ;;  %v1835_v12 = vld [vmem:[#allocation10 + $0xa4] ss:$16 sps:$4 sm:$0xff]  }
 0x470   :  { %1711 = vmatmul.mubr.msk.bf16.vlgmr.msra.gmra.mrb[12].mxu1 %vm713_vm5, %v759_v10  ;;  %v905_v13 = vsel %vm765_vm3, %v512_v11, 0  ;;  %v1832_v10 = vld [vmem:[#allocation10 + $0x8c] ss:$16 sps:$4 sm:$0xff]   ;;  %v1827_v11 = vld [vmem:[#allocation10 + $0x80] ss:$16 sps:$4 sm:$0xff]  }
 0x471   :  { %1721 = vmatpush3.bf16.msra.mxu1 %v905_v13  ;;  %1722 = vmatprep.mubr.msk.bf16.mxu1 %vm2050_vm0, %v2048_v0  ;;  %v760_v20 = vpack.c.bf16 %v756_v15, %v756_v15  ;;  %v1838_v13 = vld [vmem:[#allocation10 + $0xac] ss:$16 sps:$4 sm:$0xff]   ;;  %v1836_v15 = vld [vmem:[#allocation10 + $0xa8] ss:$16 sps:$4 sm:$0xff]  }
 0x472   :  { %1232 = vmatprep.subr.bf16.mxu1 %v1805_v52 }
 0x473   :  { %v1884_v14 = vpop.eup %1883 }
 0x474   :  { %v757_v16 = vmul.f32 %v1884_v14, %v1876_v60  ;;  %v511_v17 = vld [vmem:[#allocation2 + $0x28] sm:$0xf]  ;;  %v1833_v14 = vld [vmem:[#allocation10 + $0xa0] ss:$16 sps:$4 sm:$0xff]  }
 0x475   :  { %v859_v18 = vsel %vm765_vm3, %v511_v17, 0  ;;  %v1820_v60 = vld [vmem:[#allocation10 + $0x4c] ss:$16 sps:$4 sm:$0xff]  }
 0x476   :  { %1715 = vmatpush3.bf16.msra.mxu0 %v859_v18  ;;  %v761_v19 = vpack.c.bf16 %v757_v16, %v757_v16  ;;  %v1841_v16 = vld [vmem:[#allocation10 + $0xc4] ss:$16 sps:$4 sm:$0xff]   ;;  %v1844_v17 = vld [vmem:[#allocation10 + $0xcc] ss:$16 sps:$4 sm:$0xff]   ;;  %v1839_v18 = vld [vmem:[#allocation10 + $0xc0] ss:$16 sps:$4 sm:$0xff]  }
 0x477   :  { %1726 = vmatprep.subr.bf16.mxu0 %v2048_v0 }
 0x478   :  { %1723 = vmatmul.mubr.msk.bf16.vlgmr.msra.gmra.mrb[16].mxu1 %vm713_vm5, %v761_v19  ;;  %v1842_v19 = vld [vmem:[#allocation10 + $0xc8] ss:$16 sps:$4 sm:$0xff]  }
 0x479   :  { %1717 = vmatmul.mubr.msk.bf16.vlgmr.msra.gmra.mrb[16].mxu0 %vm713_vm5, %v760_v20  ;;  %1264 = vmatprep.mubr.bf16.mxu1 %v2049_v25  ;;  %v1847_v20 = vld [vmem:[#allocation10 + $0xe4] ss:$16 sps:$4 sm:$0xff]  }
 0x47a   :  { %1742 = vmatprep.mubr.msk.bf16.mxu0 %vm2050_vm0, %v2048_v0  ;;  %1727 = vmatpush3.bf16.msra.mxu0 %v1795_v21  ;;  %v1850_v21 = vld [vmem:[#allocation10 + $0xec] ss:$16 sps:$4 sm:$0xff]  }
 0x47b   :  { %1728 = vmatprep.subr.bf16.mxu0 %v2048_v0  ;;  %1233 = vmatpush1.bf16.msra.mxu1 %v1803_v51 }
 0x47c   :  { %1234 = vmatprep.subr.bf16.mxu1 %v1811_v55 }
 0x47e   :  { %1729 = vmatpush3.bf16.msra.mxu0 %v1796_v22  ;;  %v1845_v22 = vld [vmem:[#allocation10 + $0xe0] ss:$16 sps:$4 sm:$0xff]  }
 0x47f   :  { %1730 = vmatprep.subr.bf16.mxu0 %v2048_v0  ;;  %1235 = vmatpush1.bf16.msra.mxu1 %v1809_v57 }
 0x480   :  { %1236 = vmatprep.subr.bf16.mxu1 %v1817_v59 }
 0x482   :  { %1731 = vmatpush3.bf16.msra.mxu0 %v1797_v23  ;;  %v1848_v23 = vld [vmem:[#allocation10 + $0xe8] ss:$16 sps:$4 sm:$0xff]  }
 0x483   :  { %1732 = vmatprep.subr.bf16.mxu0 %v2048_v0  ;;  %1237 = vmatpush1.bf16.msra.mxu1 %v1815_v61 }
 0x484   :  { %1238 = vmatprep.subr.bf16.mxu1 %v1823_v6 }
 0x486   :  { %1733 = vmatpush3.bf16.msra.mxu0 %v1798_v29  ;;  %v1547_v29 = vld [vmem:[%s2313_s4] ss:$0 sm:$0xff] }
 0x487   :  { %1734 = vmatprep.subr.bf16.mxu0 %v2048_v0  ;;  %1239 = vmatpush1.bf16.msra.mxu1 %v1821_v40 }
 0x488   :  { %1240 = vmatprep.subr.bf16.mxu1 %v1829_v9 }
 0x48a   :  { %1735 = vmatpush3.bf16.msra.mxu0 %v1799_v30 }
 0x48b   :  { %1736 = vmatprep.subr.bf16.mxu0 %v2048_v0  ;;  %1241 = vmatpush1.bf16.msra.mxu1 %v1827_v11 }
 0x48c   :  { %1242 = vmatprep.subr.bf16.mxu1 %v1835_v12 }
 0x48e   :  { %1737 = vmatpush3.bf16.msra.mxu0 %v1800_v31 }
 0x48f   :  { %1738 = vmatprep.subr.bf16.mxu0 %v2048_v0  ;;  %1243 = vmatpush1.bf16.msra.mxu1 %v1833_v14 }
 0x490   :  { %1244 = vmatprep.subr.bf16.mxu1 %v1841_v16 }
 0x492   :  { %1739 = vmatpush3.bf16.msra.mxu0 %v1801_v32 }
 0x493   :  { %1740 = vmatprep.subr.bf16.mxu0 %v2048_v0  ;;  %1245 = vmatpush1.bf16.msra.mxu1 %v1839_v18  ;;  %v1598_v18 = vld [vmem:[%s2316_s7] ss:$0 sm:$0xff] }
 0x494   :  { %1246 = vmatprep.subr.bf16.mxu1 %v1847_v20 }
 0x496   :  { %1741 = vmatpush3.bf16.msra.mxu0 %v1802_v35  ;;  %v1853_v35 = vld [vmem:[#allocation12 + $0x48] sm:$0xff]  }
 0x497   :  { %1273 = vmatprep.subr.bf16.mxu0 %v1808_v54  ;;  %1247 = vmatpush1.bf16.msra.mxu1 %v1845_v22 }
 0x4dd   :  { %v803_v24 = vpop.f32.mrb[12].mxu0 }
 0x4de   :  { %947 = vst.msk [vmem:[#allocation3] sm:$0xff] %vm513_vm2, %v803_v24  ;;  %v1706_v26 = vpop.f32.mrb[13].mxu0 }
 0x4df   :  { %v806_v27 = vpop.f32.mrb[14].mxu0 }
 0x4e0   :  { %v1707_v28 = vpop.f32.mrb[15].mxu0 }
 0x543   :  { %v849_v33 = vpop.f32.mrb[12].mxu1 }
 0x544   :  { %949 = vrot.lane.b32.xlu1 %v849_v33, %s2052_s22  ;;  %v1712_v34 = vpop.f32.mrb[13].mxu1  ;;  %v1851_v33 = vld [vmem:[#allocation12 + $0x40] sm:$0xff]  }
 0x545   :  { %v852_v36 = vpop.f32.mrb[14].mxu1  ;;  %v1852_v34 = vld [vmem:[#allocation12] sm:$0xff]   ;;  %1636 = vmatprep.subr.bf16.mxu1 %v1851_v33 }
 0x546   :  { %v1713_v37 = vpop.f32.mrb[15].mxu1  ;;  %v1854_v36 = vld [vmem:[#allocation12 + $0x8] sm:$0xff]  }
 0x547   :  { %v1855_v37 = vld [vmem:[#allocation12 + $0x50] sm:$0xff]  }
 0x54b   :  { %v941_v38 = vpop.f32.mrb[16].mxu1 }
 0x54c   :  { %961 = vrot.lane.b32.xlu1 %v941_v38, %s2051_s1  ;;  %v895_v39 = vpop.f32.mrb[16].mxu0  ;;  %v1724_v41 = vpop.f32.mrb[17].mxu1  ;;  %v1856_v38 = vld [vmem:[#allocation12 + $0x10] sm:$0xff]  }
 0x54d   :  { %v944_v42 = vpop.f32.mrb[18].mxu1  ;;  %955 = vrot.lane.b32.xlu0 %v895_v39, %s2045_s0  ;;  %v1718_v43 = vpop.f32.mrb[17].mxu0  ;;  %v1857_v39 = vld [vmem:[#allocation12 + $0x58] sm:$0xff]  }
 0x54e   :  { %v898_v44 = vpop.f32.mrb[18].mxu0  ;;  %v1725_v45 = vpop.f32.mrb[19].mxu1  ;;  %v1858_v41 = vld [vmem:[#allocation12 + $0x18] sm:$0xff]   ;;  %v1859_v42 = vld [vmem:[#allocation12 + $0x60] sm:$0xff]  }
 0x54f   :  { %v1719_v46 = vpop.f32.mrb[19].mxu0  ;;  %v1860_v43 = vld [vmem:[#allocation12 + $0x20] sm:$0xff]   ;;  %v1861_v44 = vld [vmem:[#allocation12 + $0x68] sm:$0xff]  }
 0x550   :  { %v1862_v45 = vld [vmem:[#allocation12 + $0x28] sm:$0xff]   ;;  %v1863_v46 = vld [vmem:[#allocation12 + $0x70] sm:$0xff]  }
 0x5b6   :  { %v950_v47 = vpop.permute.xlu1 %949 }
 0x5b7   :  { %953 = vst.msk [vmem:[#allocation3] sm:$0xff] %vm952_vm6, %v950_v47  ;;  %v1864_v47 = vld [vmem:[#allocation12 + $0x30] sm:$0xff]  }
 0x5be   :  { %v962_v48 = vpop.permute.xlu1 %961 }
 0x5bf   :  { %v956_v0 = vpop.permute.xlu0 %955 }
 0x5c0   :  { %959 = vst.msk [vmem:[#allocation3] sm:$0xff] %vm958_vm7, %v956_v0  ;;  %v1865_v0 = vld [vmem:[#allocation12 + $0x78] sm:$0xff]  }
 0x5c1   :  { %965 = vst.msk [vmem:[#allocation3] sm:$0xff] %vm964_vm8, %v962_v48  ;;  %v1866_v48 = vld [vmem:[#allocation12 + $0x38] sm:$0xff]  }
 0x5c8   :  { %v966_v49 = vld [vmem:[#allocation3] sm:$0xff] }
 0x5c9   :  { %v967_v50 = vpack.c.bf16 %v966_v49, %v966_v49 }
 0x5cb   :  { %1743 = vmatmul.mubr.bf16.vlgmr.msra.gmra.mrb[20].mxu0 %v967_v50 }
 0x5cc   :  { %1305 = vmatprep.mubr.bf16.mxu0 %v2049_v25  ;;  %1274 = vmatpush1.bf16.msra.mxu0 %v1806_v53  ;;  %v1818_v25 = vld [vmem:[#allocation10 + $0x48] ss:$16 sps:$4 sm:$0xff]  }
 0x5cd   :  { %1275 = vmatprep.subr.bf16.mxu0 %v1814_v56 }
 0x5d0   :  { %1276 = vmatpush1.bf16.msra.mxu0 %v1812_v58 }
 0x5d1   :  { %1277 = vmatprep.subr.bf16.mxu0 %v1820_v60 }
 0x5d4   :  { %1278 = vmatpush1.bf16.msra.mxu0 %v1818_v25 }
 0x5d5   :  { %1279 = vmatprep.subr.bf16.mxu0 %v1826_v7 }
 0x5d8   :  { %1280 = vmatpush1.bf16.msra.mxu0 %v1824_v8 }
 0x5d9   :  { %1281 = vmatprep.subr.bf16.mxu0 %v1832_v10 }
 0x69e   :  { %v1050_v62 = vpop.f32.mrb[20].mxu0 }
 0x69f   :  { %v2285_v63 = vadd.f32 %v1050_v62, %v2171_v2  ;;  %v1744_v1 = vpop.f32.mrb[21].mxu0  ;;  %v1830_v2 = vld [vmem:[#allocation10 + $0x88] ss:$16 sps:$4 sm:$0xff]  }
 0x6a0   :  { %v1053_v3 = vpop.f32.mrb[22].mxu0  ;;  %1282 = vmatpush1.bf16.msra.mxu0 %v1830_v2 }
 0x6a1   :  { %v1745_v4 = vpop.f32.mrb[23].mxu0  ;;  %v1057_v5 = vmul.f32 %v2285_v63, %v2285_v63  ;;  %1283 = vmatprep.subr.bf16.mxu0 %v1838_v13 }
 0x6a3   :  { %1058 = vadd.xlane.f32.xlu0 %v1057_v5 }
 0x6a4   :  { %1284 = vmatpush1.bf16.msra.mxu0 %v1836_v15 }
 0x6a5   :  { %1285 = vmatprep.subr.bf16.mxu0 %v1844_v17 }
 0x6a8   :  { %1286 = vmatpush1.bf16.msra.mxu0 %v1842_v19 }
 0x6a9   :  { %1287 = vmatprep.subr.bf16.mxu0 %v1850_v21 }
 0x6ac   :  { %1288 = vmatpush1.bf16.msra.mxu0 %v1848_v23 }
 0x730   :  { %v1059_v24 = vpop.xlane.xlu0 %1058 }
 0x731   :  { %v1060_v26 = vmul.f32 0.0078125, %v1059_v24 }
 0x733   :  { %v1061_v27 = vadd.f32 1e-06, %v1060_v26 }
 0x735   :  { %1885 = vrsqrt.f32 %v1061_v27 }
 0x73f   :  { %v1886_v28 = vpop.eup %1885 }
 0x740   :  { %v1063_v30 = vmul.f32 %v1886_v28, %v2285_v63 }
 0x742   :  { %v1070_v31 = vmul.f32 %v1547_v29, %v1063_v30 }
 0x744   :  { %v1071_v32 = vpack.c.bf16 %v1070_v31, %v1070_v31 }
 0x746   :  { %1265 = vmatmul.mubr.bf16.vlgmr.msra.gmra.mrb[20].mxu1 %v1071_v32  ;;  %1306 = vmatmul.mubr.bf16.vlgmr.msra.gmra.mrb[24].mxu0 %v1071_v32 }
 0x747   :  { %1637 = vmatpush3.bf16.msra.mxu1 %v1852_v34 }
 0x748   :  { %1638 = vmatprep.subr.bf16.mxu1 %v1853_v35 }
 0x74b   :  { %1639 = vmatpush3.bf16.msra.mxu1 %v1854_v36 }
 0x74c   :  { %1640 = vmatprep.subr.bf16.mxu1 %v1855_v37 }
 0x74f   :  { %1641 = vmatpush3.bf16.msra.mxu1 %v1856_v38 }
 0x750   :  { %1642 = vmatprep.subr.bf16.mxu1 %v1857_v39 }
 0x753   :  { %1643 = vmatpush3.bf16.msra.mxu1 %v1858_v41 }
 0x754   :  { %1644 = vmatprep.subr.bf16.mxu1 %v1859_v42 }
 0x757   :  { %1645 = vmatpush3.bf16.msra.mxu1 %v1860_v43 }
 0x758   :  { %1646 = vmatprep.subr.bf16.mxu1 %v1861_v44 }
 0x75b   :  { %1647 = vmatpush3.bf16.msra.mxu1 %v1862_v45 }
 0x75c   :  { %1648 = vmatprep.subr.bf16.mxu1 %v1863_v46 }
 0x75f   :  { %1649 = vmatpush3.bf16.msra.mxu1 %v1864_v47 }
 0x760   :  { %1650 = vmatprep.subr.bf16.mxu1 %v1865_v0 }
 0x763   :  { %1651 = vmatpush3.bf16.msra.mxu1 %v1866_v48 }
 0x819   :  { %v1266_v49 = vpop.f32.mrb[20].mxu1  ;;  %v1307_v50 = vpop.f32.mrb[24].mxu0 }
 0x81a   :  { %v1580_v51 = vmul.f32 -1.442695, %v1266_v49  ;;  %v1268_v52 = vpop.f32.mrb[21].mxu1  ;;  %v1309_v53 = vpop.f32.mrb[25].mxu0 }
 0x81b   :  { %v1581_v54 = vmul.f32 -1.442695, %v1268_v52  ;;  %v1270_v55 = vpop.f32.mrb[22].mxu1  ;;  %v1311_v56 = vpop.f32.mrb[26].mxu0 }
 0x81c   :  { %1887 = vpow2.f32 %v1580_v51  ;;  %v1271_v57 = vpop.f32.mrb[23].mxu1  ;;  %v1312_v58 = vpop.f32.mrb[27].mxu0 }
 0x81d   :  { %1889 = vpow2.f32 %v1581_v54 }
 0x826   :  { %v1888_v59 = vpop.eup %1887 }
 0x827   :  { %v1890_v60 = vpop.eup %1889  ;;  %v1320_v61 = vadd.f32 1.0, %v1888_v59 }
 0x828   :  { %v1321_v25 = vadd.f32 1.0, %v1890_v60 }
 0x829   :  { %1891 = vrcp.f32 %v1320_v61 }
 0x82a   :  { %1893 = vrcp.f32 %v1321_v25 }
 0x833   :  { %v1892_v62 = vpop.eup %1891 }
 0x834   :  { %v1894_v1 = vpop.eup %1893  ;;  %v1326_v3 = vmul.f32 %v1892_v62, %v1266_v49 }
 0x835   :  { %v1327_v4 = vmul.f32 %v1894_v1, %v1268_v52 }
 0x836   :  { %v1328_v5 = vmul.f32 %v1326_v3, %v1307_v50 }
 0x837   :  { %v1329_v6 = vmul.f32 %v1327_v4, %v1309_v53 }
 0x838   :  { %v1330_v40 = vpack.c.bf16 %v1328_v5, %v1328_v5 }
 0x839   :  { %v1331_v7 = vpack.c.bf16 %v1329_v6, %v1329_v6 }
 0x83b   :  { %1460 = vmatprep.mubr.bf16.mxu1 %v1331_v7 }
 0x83c   :  { %1461 = vmatmul.mubr.bf16.vlgmr.msra.gmra.mrb[24].mxu1 %v1330_v40 }
 0x90f   :  { %v1652_v8 = vpop.f32.mrb[24].mxu1 }
 0x910   :  { %v1653_v9 = vpop.f32.mrb[25].mxu1 }
 0x911   :  { %v1654_v10 = vadd.f32 %v1653_v9, %v1652_v8  ;;  %v1655_v11 = vpop.f32.mrb[26].mxu1 }
 0x912   :  { %v1656_v2 = vpop.f32.mrb[27].mxu1 }
 0x913   :  { %v1468_v12 = vadd.f32 %v1654_v10, %v2285_v63 }
 0x915   :  { %v1470_v13 = vmul.f32 %v1468_v12, %v1468_v12 }
 0x917   :  { %1471 = vadd.xlane.f32.xlu1 %v1470_v13 }
 0x9a4   :  { %v1472_v14 = vpop.xlane.xlu1 %1471 }
 0x9a5   :  { %v1473_v15 = vmul.f32 0.0078125, %v1472_v14 }
 0x9a7   :  { %v1474_v16 = vadd.f32 1e-06, %v1473_v15 }
 0x9a9   :  { %1895 = vrsqrt.f32 %v1474_v16 }
 0x9b3   :  { %v1896_v17 = vpop.eup %1895 }
 0x9b4   :  { %v1476_v19 = vmul.f32 %v1896_v17, %v1468_v12 }
 0x9b6   :  { %v1483_v20 = vmul.f32 %v1598_v18, %v1476_v19 }
 0x9b8   :  { %v1484_v21 = vpack.c.bf16 %v1483_v20, %v1483_v20 }
 0x9ba   :  { %1485 = vst [vmem:[#allocation13] sm:$0xf] %v1484_v21 }
 0x9bb   :  { %2018 = shalt.err (!%p2015_p2)
}
 0x9bc   :  { %s2019_s0 = scalar_lea.hbm %s2317_s8, 64 }
 0x9bd   :  { %p2020_p3 = scmp.ne.s32.totalorder %s2317_s8, %s2019_s0  ;;  %p2023_p4 = scmp.lt.u32.totalorder %s2019_s0, %s2317_s8 }
 0x9bf   :  { %p2025_p5 = pnand %p2023_p4, %p2020_p3 }
 0x9c1   :  { %2028 = shalt.err (!%p2025_p5)
}
 0x9c2   :  { %1495 = dma.vmem_to_hbm [thread:$0]  %s1493_s27, 64, %s2317_s8, [#allocation6]  }
 0x9c3   :  { %2035 = dma.done.wait [#allocation6], 64  }
 0x9c4   :  { %2036 = vsyncadd [#allocation6], 4294967232 }
 0x9c5   :  { %1499 = vsyncpa [#allocation5], 1 }
 0x9c6   :  { %1500 = vsyncpa [#allocation8], 1 }
 0x9c7   :  { %1501 = vsyncpa [#allocation11], 1 }
 0x9c8   :  { %1502 = vsyncpa [#allocation6], 1 }

</bundles_post_ra>
